<compile_context>
chip_gen: v7x
topology: tpu7x:2x2x1
jax: 0.10.0
libtpu: 0.0.40
codegen_flags: <defaults>
</compile_context>

<pallas_src>
import functools

import jax
import jax.numpy as jnp
from jax.experimental import pallas as pl
from jax.experimental.pallas import tpu as pltpu


# Padded dimensions (all multiples of 128 / lane width).
K_PAD = 896      # 784 -> 7 * 128
H4_PAD = 128     # hidden 64 -> 128
OUT_PAD = 128    # output 10 -> 128
OUT_DIM = 10


def _mlp_kernel(x_ref,
                w1_ref, b1_ref,
                w2_ref, b2_ref,
                w3_ref, b3_ref,
                w4_ref, b4_ref,
                w5_ref, b5_ref,
                o_ref):
    # Weights are bf16 and fully VMEM-resident (~1.3 MiB total); the whole
    # forward is fused: 5 MXU matmuls (bf16 in, f32 acc) + VPU bias/ReLU.
    h = x_ref[...].astype(jnp.bfloat16)

    h = jnp.dot(h, w1_ref[...], preferred_element_type=jnp.float32) + b1_ref[...]
    h = jnp.maximum(h, 0.0).astype(jnp.bfloat16)

    h = jnp.dot(h, w2_ref[...], preferred_element_type=jnp.float32) + b2_ref[...]
    h = jnp.maximum(h, 0.0).astype(jnp.bfloat16)

    h = jnp.dot(h, w3_ref[...], preferred_element_type=jnp.float32) + b3_ref[...]
    h = jnp.maximum(h, 0.0).astype(jnp.bfloat16)

    h = jnp.dot(h, w4_ref[...], preferred_element_type=jnp.float32) + b4_ref[...]
    h = jnp.maximum(h, 0.0).astype(jnp.bfloat16)

    h = jnp.dot(h, w5_ref[...], preferred_element_type=jnp.float32) + b5_ref[...]
    o_ref[...] = h.astype(o_ref.dtype)


def _round_up(x, m):
    return ((x + m - 1) // m) * m


def _prepare_params(params):
    """Zero-pad narrow layers to MXU-friendly sizes and cast weights to bf16.

    Padding is numerically exact: zero K rows contribute nothing, padded
    hidden units get ReLU(0 + 0) = 0, and padded output columns are sliced
    off in the wrapper.
    """
    (w1, b1), (w2, b2), (w3, b3), (w4, b4), (w5, b5) = params
    w1p = jnp.pad(w1, ((0, K_PAD - 784), (0, 0)))          # (896, 512)
    w4p = jnp.pad(w4, ((0, 0), (0, H4_PAD - 64)))          # (128, 128)
    b4p = jnp.pad(b4, (0, H4_PAD - 64))                    # (128,)
    w5p = jnp.pad(w5, ((0, H4_PAD - 64), (0, OUT_PAD - OUT_DIM)))  # (128, 128)
    b5p = jnp.pad(b5, (0, OUT_PAD - OUT_DIM))              # (128,)

    ws = [w.astype(jnp.bfloat16) for w in (w1p, w2, w3, w4p, w5p)]
    # Biases stay f32, shaped (1, N) so they broadcast over the batch tile.
    bs = [b.reshape(1, -1).astype(jnp.float32) for b in (b1, b2, b3, b4p, b5p)]
    return ws, bs


@functools.partial(jax.jit, static_argnames=("tile_b",))
def mlp_forward(x, params, tile_b=256):
    """x: (B, 1, 28, 28) or (B, 784) float32. Returns (B, 10) float32.

    tile_b: batch tile. 256 fills the MXU on all generations and keeps VMEM
    well under the 32 MiB scoped default (x tile ~0.9 MiB double-buffered +
    ~1.3 MiB bf16 weights + ~0.25 MiB output), so no vmem_limit_bytes needed.
    For B >= 2*tile_b the batch grid has >= 2 "parallel" steps so v7x can
    shard across both TensorCores.
    """
    x = x.reshape(-1, 784).astype(jnp.float32)   # same as x.view(-1, 784)
    B = x.shape[0]

    ws, bs = _prepare_params(params)

    # Clamp the tile for tiny batches (keep sublane-multiple of 8), then pad
    # the batch to a tile multiple; padded rows are sliced off afterwards.
    tile = min(tile_b, _round_up(B, 8))
    b_pad = _round_up(B, tile)
    x = jnp.pad(x, ((0, b_pad - B), (0, K_PAD - 784)))

    def const_spec(arr):
        # Whole-array block, same block every grid step -> DMA'd once and
        # kept resident; no re-fetch across the batch grid.
        rank = arr.ndim
        return pl.BlockSpec(arr.shape, lambda i, r=rank: (0,) * r)

    in_specs = [pl.BlockSpec((tile, K_PAD), lambda i: (i, 0))]
    operands = [x]
    for w, b in zip(ws, bs):
        in_specs += [const_spec(w), const_spec(b)]
        operands += [w, b]

    out = pl.pallas_call(
        _mlp_kernel,
        out_shape=jax.ShapeDtypeStruct((b_pad, OUT_PAD), jnp.float32),
        grid_spec=pltpu.PrefetchScalarGridSpec(
            num_scalar_prefetch=0,
            grid=(b_pad // tile,),
            in_specs=in_specs,
            out_specs=pl.BlockSpec((tile, OUT_PAD), lambda i: (i, 0)),
        ),
        compiler_params=pltpu.CompilerParams(
            dimension_semantics=("parallel",),
        ),
    )(*operands)

    return out[:B, :OUT_DIM]


def init_params(key):
    """Deterministic init mimicking nn.Linear's uniform(-1/sqrt(fan_in), ...)."""
    dims = [784, 512, 256, 128, 64, 10]
    params = []
    for i in range(5):
        fan_in, fan_out = dims[i], dims[i + 1]
        key, kw, kb = jax.random.split(key, 3)
        bound = 1.0 / jnp.sqrt(fan_in)
        # Stored as (in, out): transpose of PyTorch's (out, in) weight.
        w = jax.random.uniform(kw, (fan_in, fan_out), jnp.float32, -bound, bound)
        b = jax.random.uniform(kb, (fan_out,), jnp.float32, -bound, bound)
        params.append((w, b))
    return params


def mlp_reference(x, params):
    """Pure-JAX f32 reference matching the PyTorch forward exactly."""
    x = x.reshape(-1, 784)
    (w1, b1), (w2, b2), (w3, b3), (w4, b4), (w5, b5) = params
    x = jnp.maximum(x @ w1 + b1, 0.0)
    x = jnp.maximum(x @ w2 + b2, 0.0)
    x = jnp.maximum(x @ w3 + b3, 0.0)
    x = jnp.maximum(x @ w4 + b4, 0.0)
    return x @ w5 + b5


def _check(x, params):
    out = jax.block_until_ready(mlp_forward(x, params))
    ref = mlp_reference(x, params)
    assert out.shape == ref.shape, (out.shape, ref.shape)
    # bf16 matmul inputs with f32 accumulation vs. pure-f32 reference.
    err = float(jnp.max(jnp.abs(out - ref)))
    scale = float(jnp.max(jnp.abs(ref)))
    assert err <= 3e-2 * scale + 1e-3, (err, scale)
    return out


if __name__ == "__main__":
    key = jax.random.PRNGKey(0)
    kx, kx2, kp = jax.random.split(key, 3)
    params = init_params(kp)

    # Small MNIST-like batch: NCHW (8, 1, 28, 28).
    x = jax.random.normal(kx, (8, 1, 28, 28), jnp.float32)
    _check(x, params)

    # Batch not a multiple of the tile: exercises the pad-and-slice path.
    x2 = jax.random.normal(kx2, (12, 1, 28, 28), jnp.float32)
    _check(x2, params)

    print("KERNEL_OK")
</pallas_src>

<mosaic_0001>
module attributes {stable_mosaic.version = 11 : i64} {
  func.func @_mlp_kernel(%arg0: i32, %arg1: memref<8x896xf32, #tpu.memory_space<vmem>>, %arg2: memref<896x512xbf16, #tpu.memory_space<vmem>>, %arg3: memref<1x512xf32, #tpu.memory_space<vmem>>, %arg4: memref<512x256xbf16, #tpu.memory_space<vmem>>, %arg5: memref<1x256xf32, #tpu.memory_space<vmem>>, %arg6: memref<256x128xbf16, #tpu.memory_space<vmem>>, %arg7: memref<1x128xf32, #tpu.memory_space<vmem>>, %arg8: memref<128x128xbf16, #tpu.memory_space<vmem>>, %arg9: memref<1x128xf32, #tpu.memory_space<vmem>>, %arg10: memref<128x128xbf16, #tpu.memory_space<vmem>>, %arg11: memref<1x128xf32, #tpu.memory_space<vmem>>, %arg12: memref<8x128xf32, #tpu.memory_space<vmem>>) attributes {dimension_semantics = [#tpu.dimension_semantics<parallel>], iteration_bounds = array<i64: 1>, scalar_prefetch = 0 : i64, scratch_operands = 0 : i64, tpu.core_type = #tpu.core_type<tc>, window_params = [{transform_indices = @transform_0, window_bounds = array<i64: 8, 896>}, {pipeline_mode = #tpu.pipeline_mode<synchronous>, transform_indices = @transform_1, window_bounds = array<i64: 896, 512>}, {pipeline_mode = #tpu.pipeline_mode<synchronous>, transform_indices = @transform_2, window_bounds = array<i64: 1, 512>}, {pipeline_mode = #tpu.pipeline_mode<synchronous>, transform_indices = @transform_3, window_bounds = array<i64: 512, 256>}, {pipeline_mode = #tpu.pipeline_mode<synchronous>, transform_indices = @transform_4, window_bounds = array<i64: 1, 256>}, {pipeline_mode = #tpu.pipeline_mode<synchronous>, transform_indices = @transform_5, window_bounds = array<i64: 256, 128>}, {pipeline_mode = #tpu.pipeline_mode<synchronous>, transform_indices = @transform_6, window_bounds = array<i64: 1, 128>}, {pipeline_mode = #tpu.pipeline_mode<synchronous>, transform_indices = @transform_7, window_bounds = array<i64: 128, 128>}, {pipeline_mode = #tpu.pipeline_mode<synchronous>, transform_indices = @transform_8, window_bounds = array<i64: 1, 128>}, {pipeline_mode = #tpu.pipeline_mode<synchronous>, transform_indices = @transform_9, window_bounds = array<i64: 128, 128>}, {pipeline_mode = #tpu.pipeline_mode<synchronous>, transform_indices = @transform_10, window_bounds = array<i64: 1, 128>}, {transform_indices = @transform_11, window_bounds = array<i64: 8, 128>}]} {
    %c0 = arith.constant 0 : index
    %c0_0 = arith.constant 0 : index
    %0 = vector.load %arg1[%c0, %c0_0] : memref<8x896xf32, #tpu.memory_space<vmem>>, vector<8x896xf32>
    %1 = arith.truncf %0 : vector<8x896xf32> to vector<8x896xbf16>
    %c0_1 = arith.constant 0 : index
    %c0_2 = arith.constant 0 : index
    %2 = vector.load %arg2[%c0_1, %c0_2] : memref<896x512xbf16, #tpu.memory_space<vmem>>, vector<896x512xbf16>
    %cst = arith.constant dense<0.000000e+00> : vector<8x512xf32>
    %3 = tpu.matmul %1, %2, %cst {dimension_numbers = #tpu.dot_dimension_numbers<[1], [0], [0], [1], [0, 0, 1, 1], [], []>} : vector<8x896xbf16>, vector<896x512xbf16>, vector<8x512xf32> -> vector<8x512xf32>
    %c0_3 = arith.constant 0 : index
    %c0_4 = arith.constant 0 : index
    %4 = vector.load %arg3[%c0_3, %c0_4] : memref<1x512xf32, #tpu.memory_space<vmem>>, vector<1x512xf32>
    %5 = vector.broadcast %4 : vector<1x512xf32> to vector<8x512xf32>
    %6 = arith.addf %3, %5 : vector<8x512xf32>
    %cst_5 = arith.constant 0.000000e+00 : f32
    %7 = vector.broadcast %cst_5 : f32 to vector<8x512xf32>
    %8 = arith.maximumf %6, %7 : vector<8x512xf32>
    %9 = arith.truncf %8 : vector<8x512xf32> to vector<8x512xbf16>
    %c0_6 = arith.constant 0 : index
    %c0_7 = arith.constant 0 : index
    %10 = vector.load %arg4[%c0_6, %c0_7] : memref<512x256xbf16, #tpu.memory_space<vmem>>, vector<512x256xbf16>
    %cst_8 = arith.constant dense<0.000000e+00> : vector<8x256xf32>
    %11 = tpu.matmul %9, %10, %cst_8 {dimension_numbers = #tpu.dot_dimension_numbers<[1], [0], [0], [1], [0, 0, 1, 1], [], []>} : vector<8x512xbf16>, vector<512x256xbf16>, vector<8x256xf32> -> vector<8x256xf32>
    %c0_9 = arith.constant 0 : index
    %c0_10 = arith.constant 0 : index
    %12 = vector.load %arg5[%c0_9, %c0_10] : memref<1x256xf32, #tpu.memory_space<vmem>>, vector<1x256xf32>
    %13 = vector.broadcast %12 : vector<1x256xf32> to vector<8x256xf32>
    %14 = arith.addf %11, %13 : vector<8x256xf32>
    %cst_11 = arith.constant 0.000000e+00 : f32
    %15 = vector.broadcast %cst_11 : f32 to vector<8x256xf32>
    %16 = arith.maximumf %14, %15 : vector<8x256xf32>
    %17 = arith.truncf %16 : vector<8x256xf32> to vector<8x256xbf16>
    %c0_12 = arith.constant 0 : index
    %c0_13 = arith.constant 0 : index
    %18 = vector.load %arg6[%c0_12, %c0_13] : memref<256x128xbf16, #tpu.memory_space<vmem>>, vector<256x128xbf16>
    %cst_14 = arith.constant dense<0.000000e+00> : vector<8x128xf32>
    %19 = tpu.matmul %17, %18, %cst_14 {dimension_numbers = #tpu.dot_dimension_numbers<[1], [0], [0], [1], [0, 0, 1, 1], [], []>} : vector<8x256xbf16>, vector<256x128xbf16>, vector<8x128xf32> -> vector<8x128xf32>
    %c0_15 = arith.constant 0 : index
    %c0_16 = arith.constant 0 : index
    %20 = vector.load %arg7[%c0_15, %c0_16] : memref<1x128xf32, #tpu.memory_space<vmem>>, vector<1x128xf32>
    %21 = vector.broadcast %20 : vector<1x128xf32> to vector<8x128xf32>
    %22 = arith.addf %19, %21 : vector<8x128xf32>
    %cst_17 = arith.constant 0.000000e+00 : f32
    %23 = vector.broadcast %cst_17 : f32 to vector<8x128xf32>
    %24 = arith.maximumf %22, %23 : vector<8x128xf32>
    %25 = arith.truncf %24 : vector<8x128xf32> to vector<8x128xbf16>
    %c0_18 = arith.constant 0 : index
    %c0_19 = arith.constant 0 : index
    %26 = vector.load %arg8[%c0_18, %c0_19] : memref<128x128xbf16, #tpu.memory_space<vmem>>, vector<128x128xbf16>
    %cst_20 = arith.constant dense<0.000000e+00> : vector<8x128xf32>
    %27 = tpu.matmul %25, %26, %cst_20 {dimension_numbers = #tpu.dot_dimension_numbers<[1], [0], [0], [1], [0, 0, 1, 1], [], []>} : vector<8x128xbf16>, vector<128x128xbf16>, vector<8x128xf32> -> vector<8x128xf32>
    %c0_21 = arith.constant 0 : index
    %c0_22 = arith.constant 0 : index
    %28 = vector.load %arg9[%c0_21, %c0_22] : memref<1x128xf32, #tpu.memory_space<vmem>>, vector<1x128xf32>
    %29 = vector.broadcast %28 : vector<1x128xf32> to vector<8x128xf32>
    %30 = arith.addf %27, %29 : vector<8x128xf32>
    %cst_23 = arith.constant 0.000000e+00 : f32
    %31 = vector.broadcast %cst_23 : f32 to vector<8x128xf32>
    %32 = arith.maximumf %30, %31 : vector<8x128xf32>
    %33 = arith.truncf %32 : vector<8x128xf32> to vector<8x128xbf16>
    %c0_24 = arith.constant 0 : index
    %c0_25 = arith.constant 0 : index
    %34 = vector.load %arg10[%c0_24, %c0_25] : memref<128x128xbf16, #tpu.memory_space<vmem>>, vector<128x128xbf16>
    %cst_26 = arith.constant dense<0.000000e+00> : vector<8x128xf32>
    %35 = tpu.matmul %33, %34, %cst_26 {dimension_numbers = #tpu.dot_dimension_numbers<[1], [0], [0], [1], [0, 0, 1, 1], [], []>} : vector<8x128xbf16>, vector<128x128xbf16>, vector<8x128xf32> -> vector<8x128xf32>
    %c0_27 = arith.constant 0 : index
    %c0_28 = arith.constant 0 : index
    %36 = vector.load %arg11[%c0_27, %c0_28] : memref<1x128xf32, #tpu.memory_space<vmem>>, vector<1x128xf32>
    %37 = vector.broadcast %36 : vector<1x128xf32> to vector<8x128xf32>
    %38 = arith.addf %35, %37 : vector<8x128xf32>
    %c0_29 = arith.constant 0 : index
    %c0_30 = arith.constant 0 : index
    %39 = vector.load %arg12[%c0_29, %c0_30] : memref<8x128xf32, #tpu.memory_space<vmem>>, vector<8x128xf32>
    tpu.vector_store %arg12[%c0_29, %c0_30], %38 {strides = array<i32>} : memref<8x128xf32, #tpu.memory_space<vmem>>, vector<8x128xf32>,
    return
  }
  func.func @transform_0(%arg0: i32) -> (i32, i32) {
    %c0_i32 = arith.constant 0 : i32
    %c0_i32_0 = arith.constant 0 : i32
    return %arg0, %c0_i32 : i32, i32
  }
  func.func @transform_1(%arg0: i32) -> (i32, i32) {
    %c0_i32 = arith.constant 0 : i32
    %c0_i32_0 = arith.constant 0 : i32
    %c0_i32_1 = arith.constant 0 : i32
    return %c0_i32, %c0_i32_0 : i32, i32
  }
  func.func @transform_2(%arg0: i32) -> (i32, i32) {
    %c0_i32 = arith.constant 0 : i32
    %c0_i32_0 = arith.constant 0 : i32
    %c0_i32_1 = arith.constant 0 : i32
    return %c0_i32, %c0_i32_0 : i32, i32
  }
  func.func @transform_3(%arg0: i32) -> (i32, i32) {
    %c0_i32 = arith.constant 0 : i32
    %c0_i32_0 = arith.constant 0 : i32
    %c0_i32_1 = arith.constant 0 : i32
    return %c0_i32, %c0_i32_0 : i32, i32
  }
  func.func @transform_4(%arg0: i32) -> (i32, i32) {
    %c0_i32 = arith.constant 0 : i32
    %c0_i32_0 = arith.constant 0 : i32
    %c0_i32_1 = arith.constant 0 : i32
    return %c0_i32, %c0_i32_0 : i32, i32
  }
  func.func @transform_5(%arg0: i32) -> (i32, i32) {
    %c0_i32 = arith.constant 0 : i32
    %c0_i32_0 = arith.constant 0 : i32
    %c0_i32_1 = arith.constant 0 : i32
    return %c0_i32, %c0_i32_0 : i32, i32
  }
  func.func @transform_6(%arg0: i32) -> (i32, i32) {
    %c0_i32 = arith.constant 0 : i32
    %c0_i32_0 = arith.constant 0 : i32
    %c0_i32_1 = arith.constant 0 : i32
    return %c0_i32, %c0_i32_0 : i32, i32
  }
  func.func @transform_7(%arg0: i32) -> (i32, i32) {
    %c0_i32 = arith.constant 0 : i32
    %c0_i32_0 = arith.constant 0 : i32
    %c0_i32_1 = arith.constant 0 : i32
    return %c0_i32, %c0_i32_0 : i32, i32
  }
  func.func @transform_8(%arg0: i32) -> (i32, i32) {
    %c0_i32 = arith.constant 0 : i32
    %c0_i32_0 = arith.constant 0 : i32
    %c0_i32_1 = arith.constant 0 : i32
    return %c0_i32, %c0_i32_0 : i32, i32
  }
  func.func @transform_9(%arg0: i32) -> (i32, i32) {
    %c0_i32 = arith.constant 0 : i32
    %c0_i32_0 = arith.constant 0 : i32
    %c0_i32_1 = arith.constant 0 : i32
    return %c0_i32, %c0_i32_0 : i32, i32
  }
  func.func @transform_10(%arg0: i32) -> (i32, i32) {
    %c0_i32 = arith.constant 0 : i32
    %c0_i32_0 = arith.constant 0 : i32
    %c0_i32_1 = arith.constant 0 : i32
    return %c0_i32, %c0_i32_0 : i32, i32
  }
  func.func @transform_11(%arg0: i32) -> (i32, i32) {
    %c0_i32 = arith.constant 0 : i32
    %c0_i32_0 = arith.constant 0 : i32
    return %arg0, %c0_i32 : i32, i32
  }
}

</mosaic_0001>

<bundles_post_ra>
// kernel: mlp_forward.1
= control target key start
LH: loop header
LB: loop body
LE: loop exit
PB: predicated region body
PF: predicated region fallthrough
CT: control target
= control target key end

     0   :  { %s4696_s0 = inlined_call_operand.vmem [shape: f32[8,896], index: 0, kind: input, shape index: {}]   ;;  %s4697_s1 = inlined_call_operand.vmem [shape: bf16[896,512], index: 1, kind: input, shape index: {}]   ;;  %s4698_s2 = inlined_call_operand.vmem [shape: f32[1,512], index: 2, kind: input, shape index: {}]   ;;  %s4699_s3 = inlined_call_operand.vmem [shape: bf16[512,256], index: 3, kind: input, shape index: {}]   ;;  %s4700_s4 = inlined_call_operand.vmem [shape: f32[1,256], index: 4, kind: input, shape index: {}]   ;;  %s4701_s5 = inlined_call_operand.vmem [shape: bf16[256,128], index: 5, kind: input, shape index: {}]   ;;  %s4702_s6 = inlined_call_operand.vmem [shape: f32[1,128], index: 6, kind: input, shape index: {}]   ;;  %s4703_s7 = inlined_call_operand.vmem [shape: bf16[128,128], index: 7, kind: input, shape index: {}]   ;;  %s4704_s8 = inlined_call_operand.vmem [shape: f32[1,128], index: 8, kind: input, shape index: {}]   ;;  %s4705_s9 = inlined_call_operand.vmem [shape: bf16[128,128], index: 9, kind: input, shape index: {}]   ;;  %s4706_s10 = inlined_call_operand.vmem [shape: f32[1,128], index: 10, kind: input, shape index: {}]   ;;  %s4707_s11 = inlined_call_operand.hbm [shape: f32[8,128], index: 11, kind: output, shape index: {}]  }
   0x1   :  { %v3095_v0 = vld [vmem:[%s4697_s1 + $0x4] ss:$16 sps:$4 sm:$0xff]   ;;  %v3097_v1 = vld [vmem:[%s4697_s1 + $0xc] ss:$16 sps:$4 sm:$0xff]   ;;  %v3099_v2 = vld [vmem:[%s4697_s1] ss:$16 sps:$4 sm:$0xff]  }
   0x2   :  { %1420 = vmatprep.subr.bf16.mxu0 %v3095_v0  ;;  %v3100_v3 = vld [vmem:[%s4697_s1 + $0x8] ss:$16 sps:$4 sm:$0xff]   ;;  %1584 = vmatprep.subr.bf16.mxu1 %v3097_v1  ;;  %v3101_v4 = vld [vmem:[%s4697_s1 + $0x24] ss:$16 sps:$4 sm:$0xff]   ;;  %v3103_v5 = vld [vmem:[%s4697_s1 + $0x2c] ss:$16 sps:$4 sm:$0xff]  }
   0x3   :  { %1421 = vmatpush1.bf16.msra.mxu0 %v3099_v2  ;;  %1585 = vmatpush1.bf16.msra.mxu1 %v3100_v3  ;;  %v3105_v6 = vld [vmem:[%s4697_s1 + $0x20] ss:$16 sps:$4 sm:$0xff]   ;;  %v3106_v7 = vld [vmem:[%s4697_s1 + $0x28] ss:$16 sps:$4 sm:$0xff]   ;;  %v3107_v8 = vld [vmem:[%s4697_s1 + $0x44] ss:$16 sps:$4 sm:$0xff]  }
   0x4   :  { %1422 = vmatprep.subr.bf16.mxu0 %v3101_v4  ;;  %1586 = vmatprep.subr.bf16.mxu1 %v3103_v5  ;;  %v3109_v9 = vld [vmem:[%s4697_s1 + $0x4c] ss:$16 sps:$4 sm:$0xff]   ;;  %v3111_v10 = vld [vmem:[%s4697_s1 + $0x40] ss:$16 sps:$4 sm:$0xff]   ;;  %v3112_v11 = vld [vmem:[%s4697_s1 + $0x48] ss:$16 sps:$4 sm:$0xff]  }
   0x5   :  { %v3113_v12 = vld [vmem:[%s4697_s1 + $0x64] ss:$16 sps:$4 sm:$0xff]   ;;  %v3115_v13 = vld [vmem:[%s4697_s1 + $0x6c] ss:$16 sps:$4 sm:$0xff]   ;;  %v3117_v14 = vld [vmem:[%s4697_s1 + $0x60] ss:$16 sps:$4 sm:$0xff]  }
   0x6   :  { %v3118_v15 = vld [vmem:[%s4697_s1 + $0x68] ss:$16 sps:$4 sm:$0xff]   ;;  %v3119_v16 = vld [vmem:[%s4697_s1 + $0x84] ss:$16 sps:$4 sm:$0xff]   ;;  %v3121_v17 = vld [vmem:[%s4697_s1 + $0x8c] ss:$16 sps:$4 sm:$0xff]  }
   0x7   :  { %1423 = vmatpush1.bf16.msra.mxu0 %v3105_v6  ;;  %1587 = vmatpush1.bf16.msra.mxu1 %v3106_v7  ;;  %v3123_v18 = vld [vmem:[%s4697_s1 + $0x80] ss:$16 sps:$4 sm:$0xff]   ;;  %v3124_v19 = vld [vmem:[%s4697_s1 + $0x88] ss:$16 sps:$4 sm:$0xff]   ;;  %v3125_v20 = vld [vmem:[%s4697_s1 + $0xa4] ss:$16 sps:$4 sm:$0xff]  }
   0x8   :  { %1424 = vmatprep.subr.bf16.mxu0 %v3107_v8  ;;  %1588 = vmatprep.subr.bf16.mxu1 %v3109_v9  ;;  %v3127_v21 = vld [vmem:[%s4697_s1 + $0xac] ss:$16 sps:$4 sm:$0xff]   ;;  %v3129_v22 = vld [vmem:[%s4697_s1 + $0xa0] ss:$16 sps:$4 sm:$0xff]   ;;  %v3130_v23 = vld [vmem:[%s4697_s1 + $0xa8] ss:$16 sps:$4 sm:$0xff]  }
   0x9   :  { %v3131_v24 = vld [vmem:[%s4697_s1 + $0xc4] ss:$16 sps:$4 sm:$0xff]   ;;  %v3133_v25 = vld [vmem:[%s4697_s1 + $0xcc] ss:$16 sps:$4 sm:$0xff]   ;;  %v3135_v26 = vld [vmem:[%s4697_s1 + $0xc0] ss:$16 sps:$4 sm:$0xff]  }
   0xa   :  { %v3136_v27 = vld [vmem:[%s4697_s1 + $0xc8] ss:$16 sps:$4 sm:$0xff]   ;;  %v3137_v28 = vld [vmem:[%s4697_s1 + $0xe4] ss:$16 sps:$4 sm:$0xff]   ;;  %v3139_v29 = vld [vmem:[%s4697_s1 + $0xec] ss:$16 sps:$4 sm:$0xff]  }
   0xb   :  { %1425 = vmatpush1.bf16.msra.mxu0 %v3111_v10  ;;  %1589 = vmatpush1.bf16.msra.mxu1 %v3112_v11  ;;  %v3141_v30 = vld [vmem:[%s4697_s1 + $0xe0] ss:$16 sps:$4 sm:$0xff]   ;;  %v3142_v31 = vld [vmem:[%s4697_s1 + $0xe8] ss:$16 sps:$4 sm:$0xff]   ;;  %v3143_v32 = vld [vmem:[%s4697_s1 + $0x104] ss:$16 sps:$4 sm:$0xff]  }
   0xc   :  { %1426 = vmatprep.subr.bf16.mxu0 %v3113_v12  ;;  %1590 = vmatprep.subr.bf16.mxu1 %v3115_v13  ;;  %v3145_v33 = vld [vmem:[%s4697_s1 + $0x10c] ss:$16 sps:$4 sm:$0xff]   ;;  %v3147_v34 = vld [vmem:[%s4697_s1 + $0x100] ss:$16 sps:$4 sm:$0xff]   ;;  %v3148_v35 = vld [vmem:[%s4697_s1 + $0x108] ss:$16 sps:$4 sm:$0xff]  }
   0xd   :  { %v3149_v36 = vld [vmem:[%s4697_s1 + $0x124] ss:$16 sps:$4 sm:$0xff]   ;;  %v3151_v37 = vld [vmem:[%s4697_s1 + $0x12c] ss:$16 sps:$4 sm:$0xff]   ;;  %v3153_v38 = vld [vmem:[%s4697_s1 + $0x120] ss:$16 sps:$4 sm:$0xff]  }
   0xe   :  { %v3154_v39 = vld [vmem:[%s4697_s1 + $0x128] ss:$16 sps:$4 sm:$0xff]   ;;  %v3155_v40 = vld [vmem:[%s4697_s1 + $0x144] ss:$16 sps:$4 sm:$0xff]   ;;  %v3157_v41 = vld [vmem:[%s4697_s1 + $0x14c] ss:$16 sps:$4 sm:$0xff]  }
   0xf   :  { %1427 = vmatpush1.bf16.msra.mxu0 %v3117_v14  ;;  %1591 = vmatpush1.bf16.msra.mxu1 %v3118_v15  ;;  %v3159_v42 = vld [vmem:[%s4697_s1 + $0x140] ss:$16 sps:$4 sm:$0xff]   ;;  %v3160_v43 = vld [vmem:[%s4697_s1 + $0x148] ss:$16 sps:$4 sm:$0xff]   ;;  %v3161_v44 = vld [vmem:[%s4697_s1 + $0x164] ss:$16 sps:$4 sm:$0xff]  }
  0x10   :  { %1428 = vmatprep.subr.bf16.mxu0 %v3119_v16  ;;  %1592 = vmatprep.subr.bf16.mxu1 %v3121_v17  ;;  %v3163_v45 = vld [vmem:[%s4697_s1 + $0x16c] ss:$16 sps:$4 sm:$0xff]   ;;  %v3165_v47 = vld [vmem:[%s4697_s1 + $0x160] ss:$16 sps:$4 sm:$0xff]   ;;  %v3166_v49 = vld [vmem:[%s4697_s1 + $0x168] ss:$16 sps:$4 sm:$0xff]  }
  0x11   :  { %v41_v46 = vld [vmem:[%s4696_s0 + $0x8] sm:$0xff]  ;;  %v3167_v50 = vld [vmem:[%s4697_s1 + $0x184] ss:$16 sps:$4 sm:$0xff]   ;;  %v3171_v52 = vld [vmem:[%s4697_s1 + $0x180] ss:$16 sps:$4 sm:$0xff]  }
  0x12   :  { %v48_v48 = vpack.c.bf16 %v41_v46, %v41_v46  ;;  %v3169_v51 = vld [vmem:[%s4697_s1 + $0x18c] ss:$16 sps:$4 sm:$0xff]   ;;  %v3172_v53 = vld [vmem:[%s4697_s1 + $0x188] ss:$16 sps:$4 sm:$0xff]   ;;  %v3173_v54 = vld [vmem:[%s4697_s1 + $0x1a4] ss:$16 sps:$4 sm:$0xff]  }
  0x13   :  { %1429 = vmatpush1.bf16.msra.mxu0 %v3123_v18  ;;  %1593 = vmatpush1.bf16.msra.mxu1 %v3124_v19  ;;  %v3175_v55 = vld [vmem:[%s4697_s1 + $0x1ac] ss:$16 sps:$4 sm:$0xff]   ;;  %v3177_v56 = vld [vmem:[%s4697_s1 + $0x1a0] ss:$16 sps:$4 sm:$0xff]   ;;  %v3178_v57 = vld [vmem:[%s4697_s1 + $0x1a8] ss:$16 sps:$4 sm:$0xff]  }
  0x14   :  { %1430 = vmatprep.subr.bf16.mxu0 %v3125_v20  ;;  %1594 = vmatprep.subr.bf16.mxu1 %v3127_v21  ;;  %v3179_v58 = vld [vmem:[%s4697_s1 + $0x1c4] ss:$16 sps:$4 sm:$0xff]   ;;  %v3181_v59 = vld [vmem:[%s4697_s1 + $0x1cc] ss:$16 sps:$4 sm:$0xff]   ;;  %v3183_v60 = vld [vmem:[%s4697_s1 + $0x1c0] ss:$16 sps:$4 sm:$0xff]  }
  0x15   :  { %1452 = vmatprep.mubr.bf16.mxu0 %v48_v48  ;;  %1616 = vmatprep.mubr.bf16.mxu1 %v48_v48  ;;  %v3184_v61 = vld [vmem:[%s4697_s1 + $0x1c8] ss:$16 sps:$4 sm:$0xff]   ;;  %v3185_v62 = vld [vmem:[%s4697_s1 + $0x1e4] ss:$16 sps:$4 sm:$0xff]   ;;  %v3187_v63 = vld [vmem:[%s4697_s1 + $0x1ec] ss:$16 sps:$4 sm:$0xff]  }
  0x16   :  { %v3189_v0 = vld [vmem:[%s4697_s1 + $0x1e0] ss:$16 sps:$4 sm:$0xff]   ;;  %v3190_v1 = vld [vmem:[%s4697_s1 + $0x1e8] ss:$16 sps:$4 sm:$0xff]   ;;  %v3193_v3 = vld [vmem:[%s4697_s1 + $0x204] ss:$16 sps:$4 sm:$0xff]  }
  0x17   :  { %1431 = vmatpush1.bf16.msra.mxu0 %v3129_v22  ;;  %1595 = vmatpush1.bf16.msra.mxu1 %v3130_v23  ;;  %v40_v2 = vld [vmem:[%s4696_s0] sm:$0xff]  ;;  %v3196_v4 = vld [vmem:[%s4697_s1 + $0x20c] ss:$16 sps:$4 sm:$0xff]   ;;  %v3194_v7 = vld [vmem:[%s4697_s1 + $0x208] ss:$16 sps:$4 sm:$0xff]  }
  0x18   :  { %1432 = vmatprep.subr.bf16.mxu0 %v3131_v24  ;;  %1596 = vmatprep.subr.bf16.mxu1 %v3133_v25  ;;  %v47_v5 = vpack.c.bf16 %v40_v2, %v40_v2  ;;  %v3191_v6 = vld [vmem:[%s4697_s1 + $0x200] ss:$16 sps:$4 sm:$0xff]   ;;  %v3199_v8 = vld [vmem:[%s4697_s1 + $0x224] ss:$16 sps:$4 sm:$0xff]   ;;  %v3202_v9 = vld [vmem:[%s4697_s1 + $0x22c] ss:$16 sps:$4 sm:$0xff]  }
  0x19   :  { %v3197_v10 = vld [vmem:[%s4697_s1 + $0x220] ss:$16 sps:$4 sm:$0xff]   ;;  %v3200_v11 = vld [vmem:[%s4697_s1 + $0x228] ss:$16 sps:$4 sm:$0xff]   ;;  %v3205_v12 = vld [vmem:[%s4697_s1 + $0x244] ss:$16 sps:$4 sm:$0xff]  }
  0x1a   :  { %v3208_v13 = vld [vmem:[%s4697_s1 + $0x24c] ss:$16 sps:$4 sm:$0xff]   ;;  %v3203_v14 = vld [vmem:[%s4697_s1 + $0x240] ss:$16 sps:$4 sm:$0xff]   ;;  %v3206_v15 = vld [vmem:[%s4697_s1 + $0x248] ss:$16 sps:$4 sm:$0xff]  }
  0x1b   :  { %1433 = vmatpush1.bf16.msra.mxu0 %v3135_v26  ;;  %1597 = vmatpush1.bf16.msra.mxu1 %v3136_v27  ;;  %v3211_v16 = vld [vmem:[%s4697_s1 + $0x264] ss:$16 sps:$4 sm:$0xff]   ;;  %v3214_v17 = vld [vmem:[%s4697_s1 + $0x26c] ss:$16 sps:$4 sm:$0xff]   ;;  %v3209_v18 = vld [vmem:[%s4697_s1 + $0x260] ss:$16 sps:$4 sm:$0xff]  }
  0x1c   :  { %1434 = vmatprep.subr.bf16.mxu0 %v3137_v28  ;;  %1598 = vmatprep.subr.bf16.mxu1 %v3139_v29  ;;  %v3212_v19 = vld [vmem:[%s4697_s1 + $0x268] ss:$16 sps:$4 sm:$0xff]   ;;  %v3217_v20 = vld [vmem:[%s4697_s1 + $0x284] ss:$16 sps:$4 sm:$0xff]   ;;  %v3220_v21 = vld [vmem:[%s4697_s1 + $0x28c] ss:$16 sps:$4 sm:$0xff]  }
  0x1d   :  { %v3215_v22 = vld [vmem:[%s4697_s1 + $0x280] ss:$16 sps:$4 sm:$0xff]   ;;  %v3218_v23 = vld [vmem:[%s4697_s1 + $0x288] ss:$16 sps:$4 sm:$0xff]   ;;  %v3223_v24 = vld [vmem:[%s4697_s1 + $0x2a4] ss:$16 sps:$4 sm:$0xff]  }
  0x1e   :  { %v3226_v25 = vld [vmem:[%s4697_s1 + $0x2ac] ss:$16 sps:$4 sm:$0xff]   ;;  %v3221_v26 = vld [vmem:[%s4697_s1 + $0x2a0] ss:$16 sps:$4 sm:$0xff]   ;;  %v3224_v27 = vld [vmem:[%s4697_s1 + $0x2a8] ss:$16 sps:$4 sm:$0xff]  }
  0x1f   :  { %1435 = vmatpush1.bf16.msra.mxu0 %v3141_v30  ;;  %1599 = vmatpush1.bf16.msra.mxu1 %v3142_v31  ;;  %v3229_v28 = vld [vmem:[%s4697_s1 + $0x2c4] ss:$16 sps:$4 sm:$0xff]   ;;  %v3232_v29 = vld [vmem:[%s4697_s1 + $0x2cc] ss:$16 sps:$4 sm:$0xff]   ;;  %v3227_v31 = vld [vmem:[%s4697_s1 + $0x2c0] ss:$16 sps:$4 sm:$0xff]  }
  0x20   :  { %1436 = vmatprep.subr.bf16.mxu0 %v3143_v32  ;;  %1600 = vmatprep.subr.bf16.mxu1 %v3145_v33  ;;  %v43_v30 = vld [vmem:[%s4696_s0 + $0x18] sm:$0xff]  ;;  %v3253_v46 = vld [vmem:[%s4697_s1 + $0x344] ss:$16 sps:$4 sm:$0xff]   ;;  %v3251_v48 = vld [vmem:[%s4697_s1 + $0x340] ss:$16 sps:$4 sm:$0xff]  }
  0x21   :  { %v50_v32 = vpack.c.bf16 %v43_v30, %v43_v30  ;;  %v3230_v33 = vld [vmem:[%s4697_s1 + $0x2c8] ss:$16 sps:$4 sm:$0xff]   ;;  %v3283_v2 = vld [vmem:[%s4697_s1 + $0x3e4] ss:$16 sps:$4 sm:$0xff]  }
  0x22   :  { %v3319_v30 = vld [vmem:[%s4697_s1 + $0x4a4] ss:$16 sps:$4 sm:$0xff]  }
  0x23   :  { %1437 = vmatpush1.bf16.msra.mxu0 %v3147_v34  ;;  %1601 = vmatpush1.bf16.msra.mxu1 %v3148_v35  ;;  %v3235_v34 = vld [vmem:[%s4697_s1 + $0x2e4] ss:$16 sps:$4 sm:$0xff]   ;;  %v3238_v35 = vld [vmem:[%s4697_s1 + $0x2ec] ss:$16 sps:$4 sm:$0xff]  }
  0x24   :  { %1438 = vmatprep.subr.bf16.mxu0 %v3149_v36  ;;  %1602 = vmatprep.subr.bf16.mxu1 %v3151_v37  ;;  %v3233_v36 = vld [vmem:[%s4697_s1 + $0x2e0] ss:$16 sps:$4 sm:$0xff]   ;;  %v3236_v37 = vld [vmem:[%s4697_s1 + $0x2e8] ss:$16 sps:$4 sm:$0xff]  }
  0x27   :  { %1439 = vmatpush1.bf16.msra.mxu0 %v3153_v38  ;;  %1603 = vmatpush1.bf16.msra.mxu1 %v3154_v39  ;;  %v3241_v38 = vld [vmem:[%s4697_s1 + $0x304] ss:$16 sps:$4 sm:$0xff]   ;;  %v3244_v39 = vld [vmem:[%s4697_s1 + $0x30c] ss:$16 sps:$4 sm:$0xff]  }
  0x28   :  { %1440 = vmatprep.subr.bf16.mxu0 %v3155_v40  ;;  %1604 = vmatprep.subr.bf16.mxu1 %v3157_v41  ;;  %v3239_v40 = vld [vmem:[%s4697_s1 + $0x300] ss:$16 sps:$4 sm:$0xff]   ;;  %v3242_v41 = vld [vmem:[%s4697_s1 + $0x308] ss:$16 sps:$4 sm:$0xff]  }
  0x2b   :  { %1441 = vmatpush1.bf16.msra.mxu0 %v3159_v42  ;;  %1605 = vmatpush1.bf16.msra.mxu1 %v3160_v43  ;;  %v3247_v42 = vld [vmem:[%s4697_s1 + $0x324] ss:$16 sps:$4 sm:$0xff]   ;;  %v3250_v43 = vld [vmem:[%s4697_s1 + $0x32c] ss:$16 sps:$4 sm:$0xff]  }
  0x2c   :  { %1442 = vmatprep.subr.bf16.mxu0 %v3161_v44  ;;  %1606 = vmatprep.subr.bf16.mxu1 %v3163_v45  ;;  %v3245_v44 = vld [vmem:[%s4697_s1 + $0x320] ss:$16 sps:$4 sm:$0xff]   ;;  %v3248_v45 = vld [vmem:[%s4697_s1 + $0x328] ss:$16 sps:$4 sm:$0xff]  }
  0x2f   :  { %1443 = vmatpush1.bf16.msra.mxu0 %v3165_v47  ;;  %1607 = vmatpush1.bf16.msra.mxu1 %v3166_v49  ;;  %v3256_v47 = vld [vmem:[%s4697_s1 + $0x34c] ss:$16 sps:$4 sm:$0xff]   ;;  %v3254_v49 = vld [vmem:[%s4697_s1 + $0x348] ss:$16 sps:$4 sm:$0xff]  }
  0x30   :  { %1444 = vmatprep.subr.bf16.mxu0 %v3167_v50  ;;  %1608 = vmatprep.subr.bf16.mxu1 %v3169_v51  ;;  %v3259_v50 = vld [vmem:[%s4697_s1 + $0x364] ss:$16 sps:$4 sm:$0xff]   ;;  %v3262_v51 = vld [vmem:[%s4697_s1 + $0x36c] ss:$16 sps:$4 sm:$0xff]  }
  0x33   :  { %1445 = vmatpush1.bf16.msra.mxu0 %v3171_v52  ;;  %1609 = vmatpush1.bf16.msra.mxu1 %v3172_v53  ;;  %v3257_v52 = vld [vmem:[%s4697_s1 + $0x360] ss:$16 sps:$4 sm:$0xff]   ;;  %v3260_v53 = vld [vmem:[%s4697_s1 + $0x368] ss:$16 sps:$4 sm:$0xff]  }
  0x34   :  { %1446 = vmatprep.subr.bf16.mxu0 %v3173_v54  ;;  %1610 = vmatprep.subr.bf16.mxu1 %v3175_v55  ;;  %v3265_v54 = vld [vmem:[%s4697_s1 + $0x384] ss:$16 sps:$4 sm:$0xff]   ;;  %v3268_v55 = vld [vmem:[%s4697_s1 + $0x38c] ss:$16 sps:$4 sm:$0xff]  }
  0x37   :  { %1447 = vmatpush1.bf16.msra.mxu0 %v3177_v56  ;;  %1611 = vmatpush1.bf16.msra.mxu1 %v3178_v57  ;;  %v3263_v56 = vld [vmem:[%s4697_s1 + $0x380] ss:$16 sps:$4 sm:$0xff]   ;;  %v3266_v57 = vld [vmem:[%s4697_s1 + $0x388] ss:$16 sps:$4 sm:$0xff]  }
  0x38   :  { %1448 = vmatprep.subr.bf16.mxu0 %v3179_v58  ;;  %1612 = vmatprep.subr.bf16.mxu1 %v3181_v59  ;;  %v3271_v58 = vld [vmem:[%s4697_s1 + $0x3a4] ss:$16 sps:$4 sm:$0xff]   ;;  %v3274_v59 = vld [vmem:[%s4697_s1 + $0x3ac] ss:$16 sps:$4 sm:$0xff]  }
  0x3b   :  { %1449 = vmatpush1.bf16.msra.mxu0 %v3183_v60  ;;  %1613 = vmatpush1.bf16.msra.mxu1 %v3184_v61  ;;  %v3269_v60 = vld [vmem:[%s4697_s1 + $0x3a0] ss:$16 sps:$4 sm:$0xff]   ;;  %v3272_v61 = vld [vmem:[%s4697_s1 + $0x3a8] ss:$16 sps:$4 sm:$0xff]  }
  0x3c   :  { %1450 = vmatprep.subr.bf16.mxu0 %v3185_v62  ;;  %1614 = vmatprep.subr.bf16.mxu1 %v3187_v63  ;;  %v3277_v62 = vld [vmem:[%s4697_s1 + $0x3c4] ss:$16 sps:$4 sm:$0xff]   ;;  %v3280_v63 = vld [vmem:[%s4697_s1 + $0x3cc] ss:$16 sps:$4 sm:$0xff]  }
  0x3f   :  { %1451 = vmatpush1.bf16.msra.mxu0 %v3189_v0  ;;  %1615 = vmatpush1.bf16.msra.mxu1 %v3190_v1  ;;  %v3275_v0 = vld [vmem:[%s4697_s1 + $0x3c0] ss:$16 sps:$4 sm:$0xff]   ;;  %v3278_v1 = vld [vmem:[%s4697_s1 + $0x3c8] ss:$16 sps:$4 sm:$0xff]  }
  0x40   :  { %1461 = vmatprep.subr.bf16.mxu0 %v3193_v3  ;;  %1625 = vmatprep.subr.bf16.mxu1 %v3196_v4  ;;  %v3286_v3 = vld [vmem:[%s4697_s1 + $0x3ec] ss:$16 sps:$4 sm:$0xff]   ;;  %v3281_v4 = vld [vmem:[%s4697_s1 + $0x3e0] ss:$16 sps:$4 sm:$0xff]  }
  0x42   :  { %1453 = vmatmul.mubr.bf16.vlgmr.msra.gmra.mrb[0].mxu0 %v47_v5  ;;  %1617 = vmatmul.mubr.bf16.vlgmr.msra.gmra.mrb[0].mxu1 %v47_v5  ;;  %v3284_v5 = vld [vmem:[%s4697_s1 + $0x3e8] ss:$16 sps:$4 sm:$0xff]  }
  0x43   :  { %1462 = vmatpush1.bf16.msra.mxu0 %v3191_v6  ;;  %1626 = vmatpush1.bf16.msra.mxu1 %v3194_v7  ;;  %v3289_v6 = vld [vmem:[%s4697_s1 + $0x404] ss:$16 sps:$4 sm:$0xff]  }
  0x44   :  { %1463 = vmatprep.subr.bf16.mxu0 %v3199_v8  ;;  %1627 = vmatprep.subr.bf16.mxu1 %v3202_v9  ;;  %v42_v7 = vld [vmem:[%s4696_s0 + $0x10] sm:$0xff]  ;;  %v3292_v8 = vld [vmem:[%s4697_s1 + $0x40c] ss:$16 sps:$4 sm:$0xff]  }
  0x45   :  { %1493 = vmatprep.mubr.bf16.mxu0 %v50_v32  ;;  %1657 = vmatprep.mubr.bf16.mxu1 %v50_v32  ;;  %v3287_v9 = vld [vmem:[%s4697_s1 + $0x400] ss:$16 sps:$4 sm:$0xff]  }
  0x46   :  { %v3317_v32 = vld [vmem:[%s4697_s1 + $0x4a0] ss:$16 sps:$4 sm:$0xff]  }
  0x47   :  { %1464 = vmatpush1.bf16.msra.mxu0 %v3197_v10  ;;  %1628 = vmatpush1.bf16.msra.mxu1 %v3200_v11  ;;  %v3290_v10 = vld [vmem:[%s4697_s1 + $0x408] ss:$16 sps:$4 sm:$0xff]   ;;  %v49_v11 = vpack.c.bf16 %v42_v7, %v42_v7  ;;  %v3382_v7 = vld [vmem:[%s4697_s1 + $0x5ec] ss:$16 sps:$4 sm:$0xff]  }
  0x48   :  { %1465 = vmatprep.subr.bf16.mxu0 %v3205_v12  ;;  %1629 = vmatprep.subr.bf16.mxu1 %v3208_v13  ;;  %v3295_v12 = vld [vmem:[%s4697_s1 + $0x424] ss:$16 sps:$4 sm:$0xff]   ;;  %v3298_v13 = vld [vmem:[%s4697_s1 + $0x42c] ss:$16 sps:$4 sm:$0xff]  }
  0x4b   :  { %1466 = vmatpush1.bf16.msra.mxu0 %v3203_v14  ;;  %1630 = vmatpush1.bf16.msra.mxu1 %v3206_v15  ;;  %v45_v14 = vld [vmem:[%s4696_s0 + $0x28] sm:$0xff] }
  0x4c   :  { %1467 = vmatprep.subr.bf16.mxu0 %v3211_v16  ;;  %1631 = vmatprep.subr.bf16.mxu1 %v3214_v17  ;;  %v52_v15 = vpack.c.bf16 %v45_v14, %v45_v14  ;;  %v3293_v16 = vld [vmem:[%s4697_s1 + $0x420] ss:$16 sps:$4 sm:$0xff]   ;;  %v3296_v17 = vld [vmem:[%s4697_s1 + $0x428] ss:$16 sps:$4 sm:$0xff]  }
  0x4d   :  { %v3386_v14 = vld [vmem:[%s4697_s1 + $0x608] ss:$16 sps:$4 sm:$0xff]  }
  0x4f   :  { %1468 = vmatpush1.bf16.msra.mxu0 %v3209_v18  ;;  %1632 = vmatpush1.bf16.msra.mxu1 %v3212_v19  ;;  %v3301_v18 = vld [vmem:[%s4697_s1 + $0x444] ss:$16 sps:$4 sm:$0xff]   ;;  %v3304_v19 = vld [vmem:[%s4697_s1 + $0x44c] ss:$16 sps:$4 sm:$0xff]  }
  0x50   :  { %1469 = vmatprep.subr.bf16.mxu0 %v3217_v20  ;;  %1633 = vmatprep.subr.bf16.mxu1 %v3220_v21  ;;  %v3299_v20 = vld [vmem:[%s4697_s1 + $0x440] ss:$16 sps:$4 sm:$0xff]   ;;  %v3302_v21 = vld [vmem:[%s4697_s1 + $0x448] ss:$16 sps:$4 sm:$0xff]  }
  0x53   :  { %1470 = vmatpush1.bf16.msra.mxu0 %v3215_v22  ;;  %1634 = vmatpush1.bf16.msra.mxu1 %v3218_v23  ;;  %v3307_v22 = vld [vmem:[%s4697_s1 + $0x464] ss:$16 sps:$4 sm:$0xff]   ;;  %v3310_v23 = vld [vmem:[%s4697_s1 + $0x46c] ss:$16 sps:$4 sm:$0xff]  }
  0x54   :  { %1471 = vmatprep.subr.bf16.mxu0 %v3223_v24  ;;  %1635 = vmatprep.subr.bf16.mxu1 %v3226_v25  ;;  %v3305_v24 = vld [vmem:[%s4697_s1 + $0x460] ss:$16 sps:$4 sm:$0xff]   ;;  %v3308_v25 = vld [vmem:[%s4697_s1 + $0x468] ss:$16 sps:$4 sm:$0xff]  }
  0x57   :  { %1472 = vmatpush1.bf16.msra.mxu0 %v3221_v26  ;;  %1636 = vmatpush1.bf16.msra.mxu1 %v3224_v27  ;;  %v3313_v26 = vld [vmem:[%s4697_s1 + $0x484] ss:$16 sps:$4 sm:$0xff]   ;;  %v3316_v27 = vld [vmem:[%s4697_s1 + $0x48c] ss:$16 sps:$4 sm:$0xff]  }
  0x58   :  { %1473 = vmatprep.subr.bf16.mxu0 %v3229_v28  ;;  %1637 = vmatprep.subr.bf16.mxu1 %v3232_v29  ;;  %v3311_v28 = vld [vmem:[%s4697_s1 + $0x480] ss:$16 sps:$4 sm:$0xff]   ;;  %v3314_v29 = vld [vmem:[%s4697_s1 + $0x488] ss:$16 sps:$4 sm:$0xff]  }
  0x5b   :  { %1474 = vmatpush1.bf16.msra.mxu0 %v3227_v31  ;;  %1638 = vmatpush1.bf16.msra.mxu1 %v3230_v33  ;;  %v3322_v31 = vld [vmem:[%s4697_s1 + $0x4ac] ss:$16 sps:$4 sm:$0xff]   ;;  %v3320_v33 = vld [vmem:[%s4697_s1 + $0x4a8] ss:$16 sps:$4 sm:$0xff]  }
  0x5c   :  { %1475 = vmatprep.subr.bf16.mxu0 %v3235_v34  ;;  %1639 = vmatprep.subr.bf16.mxu1 %v3238_v35  ;;  %v3325_v34 = vld [vmem:[%s4697_s1 + $0x4c4] ss:$16 sps:$4 sm:$0xff]   ;;  %v3328_v35 = vld [vmem:[%s4697_s1 + $0x4cc] ss:$16 sps:$4 sm:$0xff]  }
  0x5f   :  { %1476 = vmatpush1.bf16.msra.mxu0 %v3233_v36  ;;  %1640 = vmatpush1.bf16.msra.mxu1 %v3236_v37  ;;  %v3323_v36 = vld [vmem:[%s4697_s1 + $0x4c0] ss:$16 sps:$4 sm:$0xff]   ;;  %v3326_v37 = vld [vmem:[%s4697_s1 + $0x4c8] ss:$16 sps:$4 sm:$0xff]  }
  0x60   :  { %1477 = vmatprep.subr.bf16.mxu0 %v3241_v38  ;;  %1641 = vmatprep.subr.bf16.mxu1 %v3244_v39  ;;  %v3331_v38 = vld [vmem:[%s4697_s1 + $0x4e4] ss:$16 sps:$4 sm:$0xff]   ;;  %v3334_v39 = vld [vmem:[%s4697_s1 + $0x4ec] ss:$16 sps:$4 sm:$0xff]  }
  0x63   :  { %1478 = vmatpush1.bf16.msra.mxu0 %v3239_v40  ;;  %1642 = vmatpush1.bf16.msra.mxu1 %v3242_v41  ;;  %v3329_v40 = vld [vmem:[%s4697_s1 + $0x4e0] ss:$16 sps:$4 sm:$0xff]   ;;  %v3332_v41 = vld [vmem:[%s4697_s1 + $0x4e8] ss:$16 sps:$4 sm:$0xff]  }
  0x64   :  { %1479 = vmatprep.subr.bf16.mxu0 %v3247_v42  ;;  %1643 = vmatprep.subr.bf16.mxu1 %v3250_v43  ;;  %v3337_v42 = vld [vmem:[%s4697_s1 + $0x504] ss:$16 sps:$4 sm:$0xff]   ;;  %v3340_v43 = vld [vmem:[%s4697_s1 + $0x50c] ss:$16 sps:$4 sm:$0xff]  }
  0x67   :  { %1480 = vmatpush1.bf16.msra.mxu0 %v3245_v44  ;;  %1644 = vmatpush1.bf16.msra.mxu1 %v3248_v45  ;;  %v3335_v44 = vld [vmem:[%s4697_s1 + $0x500] ss:$16 sps:$4 sm:$0xff]   ;;  %v3338_v45 = vld [vmem:[%s4697_s1 + $0x508] ss:$16 sps:$4 sm:$0xff]  }
  0x68   :  { %1481 = vmatprep.subr.bf16.mxu0 %v3253_v46  ;;  %1645 = vmatprep.subr.bf16.mxu1 %v3256_v47  ;;  %v3343_v46 = vld [vmem:[%s4697_s1 + $0x524] ss:$16 sps:$4 sm:$0xff]   ;;  %v3346_v47 = vld [vmem:[%s4697_s1 + $0x52c] ss:$16 sps:$4 sm:$0xff]  }
  0x6b   :  { %1482 = vmatpush1.bf16.msra.mxu0 %v3251_v48  ;;  %1646 = vmatpush1.bf16.msra.mxu1 %v3254_v49  ;;  %v3341_v48 = vld [vmem:[%s4697_s1 + $0x520] ss:$16 sps:$4 sm:$0xff]   ;;  %v3344_v49 = vld [vmem:[%s4697_s1 + $0x528] ss:$16 sps:$4 sm:$0xff]  }
  0x6c   :  { %1483 = vmatprep.subr.bf16.mxu0 %v3259_v50  ;;  %1647 = vmatprep.subr.bf16.mxu1 %v3262_v51  ;;  %v3349_v50 = vld [vmem:[%s4697_s1 + $0x544] ss:$16 sps:$4 sm:$0xff]   ;;  %v3352_v51 = vld [vmem:[%s4697_s1 + $0x54c] ss:$16 sps:$4 sm:$0xff]  }
  0x6f   :  { %1484 = vmatpush1.bf16.msra.mxu0 %v3257_v52  ;;  %1648 = vmatpush1.bf16.msra.mxu1 %v3260_v53  ;;  %v3347_v52 = vld [vmem:[%s4697_s1 + $0x540] ss:$16 sps:$4 sm:$0xff]   ;;  %v3350_v53 = vld [vmem:[%s4697_s1 + $0x548] ss:$16 sps:$4 sm:$0xff]  }
  0x70   :  { %1485 = vmatprep.subr.bf16.mxu0 %v3265_v54  ;;  %1649 = vmatprep.subr.bf16.mxu1 %v3268_v55  ;;  %v3355_v54 = vld [vmem:[%s4697_s1 + $0x564] ss:$16 sps:$4 sm:$0xff]   ;;  %v3358_v55 = vld [vmem:[%s4697_s1 + $0x56c] ss:$16 sps:$4 sm:$0xff]  }
  0x73   :  { %1486 = vmatpush1.bf16.msra.mxu0 %v3263_v56  ;;  %1650 = vmatpush1.bf16.msra.mxu1 %v3266_v57  ;;  %v3353_v56 = vld [vmem:[%s4697_s1 + $0x560] ss:$16 sps:$4 sm:$0xff]   ;;  %v3356_v57 = vld [vmem:[%s4697_s1 + $0x568] ss:$16 sps:$4 sm:$0xff]  }
  0x74   :  { %1487 = vmatprep.subr.bf16.mxu0 %v3271_v58  ;;  %1651 = vmatprep.subr.bf16.mxu1 %v3274_v59  ;;  %v3361_v58 = vld [vmem:[%s4697_s1 + $0x584] ss:$16 sps:$4 sm:$0xff]   ;;  %v3364_v59 = vld [vmem:[%s4697_s1 + $0x58c] ss:$16 sps:$4 sm:$0xff]  }
  0x77   :  { %1488 = vmatpush1.bf16.msra.mxu0 %v3269_v60  ;;  %1652 = vmatpush1.bf16.msra.mxu1 %v3272_v61  ;;  %v3359_v60 = vld [vmem:[%s4697_s1 + $0x580] ss:$16 sps:$4 sm:$0xff]   ;;  %v3362_v61 = vld [vmem:[%s4697_s1 + $0x588] ss:$16 sps:$4 sm:$0xff]  }
  0x78   :  { %1489 = vmatprep.subr.bf16.mxu0 %v3277_v62  ;;  %1653 = vmatprep.subr.bf16.mxu1 %v3280_v63  ;;  %v3367_v62 = vld [vmem:[%s4697_s1 + $0x5a4] ss:$16 sps:$4 sm:$0xff]   ;;  %v3370_v63 = vld [vmem:[%s4697_s1 + $0x5ac] ss:$16 sps:$4 sm:$0xff]  }
  0x7b   :  { %1490 = vmatpush1.bf16.msra.mxu0 %v3275_v0  ;;  %1654 = vmatpush1.bf16.msra.mxu1 %v3278_v1  ;;  %v3365_v0 = vld [vmem:[%s4697_s1 + $0x5a0] ss:$16 sps:$4 sm:$0xff]   ;;  %v3368_v1 = vld [vmem:[%s4697_s1 + $0x5a8] ss:$16 sps:$4 sm:$0xff]  }
  0x7c   :  { %1491 = vmatprep.subr.bf16.mxu0 %v3283_v2  ;;  %1655 = vmatprep.subr.bf16.mxu1 %v3286_v3  ;;  %v3373_v2 = vld [vmem:[%s4697_s1 + $0x5c4] ss:$16 sps:$4 sm:$0xff]   ;;  %v3376_v3 = vld [vmem:[%s4697_s1 + $0x5cc] ss:$16 sps:$4 sm:$0xff]  }
  0x7f   :  { %1492 = vmatpush1.bf16.msra.mxu0 %v3281_v4  ;;  %1656 = vmatpush1.bf16.msra.mxu1 %v3284_v5  ;;  %v3371_v4 = vld [vmem:[%s4697_s1 + $0x5c0] ss:$16 sps:$4 sm:$0xff]   ;;  %v3374_v5 = vld [vmem:[%s4697_s1 + $0x5c8] ss:$16 sps:$4 sm:$0xff]  }
  0x80   :  { %1502 = vmatprep.subr.bf16.mxu0 %v3289_v6  ;;  %1666 = vmatprep.subr.bf16.mxu1 %v3292_v8  ;;  %v3379_v6 = vld [vmem:[%s4697_s1 + $0x5e4] ss:$16 sps:$4 sm:$0xff]   ;;  %v3377_v8 = vld [vmem:[%s4697_s1 + $0x5e0] ss:$16 sps:$4 sm:$0xff]  }
  0x82   :  { %1494 = vmatmul.mubr.bf16.vlgmr.msra.gmra.mrb[0].mxu0 %v49_v11  ;;  %1658 = vmatmul.mubr.bf16.vlgmr.msra.gmra.mrb[0].mxu1 %v49_v11  ;;  %v3385_v11 = vld [vmem:[%s4697_s1 + $0x604] ss:$16 sps:$4 sm:$0xff]  }
  0x83   :  { %1503 = vmatpush1.bf16.msra.mxu0 %v3287_v9  ;;  %1667 = vmatpush1.bf16.msra.mxu1 %v3290_v10  ;;  %v3380_v9 = vld [vmem:[%s4697_s1 + $0x5e8] ss:$16 sps:$4 sm:$0xff]   ;;  %v44_v10 = vld [vmem:[%s4696_s0 + $0x20] sm:$0xff] }
  0x84   :  { %1504 = vmatprep.subr.bf16.mxu0 %v3295_v12  ;;  %1668 = vmatprep.subr.bf16.mxu1 %v3298_v13  ;;  %v3388_v12 = vld [vmem:[%s4697_s1 + $0x60c] ss:$16 sps:$4 sm:$0xff]   ;;  %v3383_v13 = vld [vmem:[%s4697_s1 + $0x600] ss:$16 sps:$4 sm:$0xff]  }
  0x85   :  { %1534 = vmatprep.mubr.bf16.mxu0 %v52_v15  ;;  %1698 = vmatprep.mubr.bf16.mxu1 %v52_v15  ;;  %v51_v15 = vpack.c.bf16 %v44_v10, %v44_v10 }
  0x87   :  { %1505 = vmatpush1.bf16.msra.mxu0 %v3293_v16  ;;  %1669 = vmatpush1.bf16.msra.mxu1 %v3296_v17  ;;  %v3391_v16 = vld [vmem:[%s4697_s1 + $0x624] ss:$16 sps:$4 sm:$0xff]   ;;  %v3394_v17 = vld [vmem:[%s4697_s1 + $0x62c] ss:$16 sps:$4 sm:$0xff]  }
  0x88   :  { %1506 = vmatprep.subr.bf16.mxu0 %v3301_v18  ;;  %1670 = vmatprep.subr.bf16.mxu1 %v3304_v19  ;;  %v3389_v18 = vld [vmem:[%s4697_s1 + $0x620] ss:$16 sps:$4 sm:$0xff]   ;;  %v3392_v19 = vld [vmem:[%s4697_s1 + $0x628] ss:$16 sps:$4 sm:$0xff]  }
  0x8b   :  { %1507 = vmatpush1.bf16.msra.mxu0 %v3299_v20  ;;  %1671 = vmatpush1.bf16.msra.mxu1 %v3302_v21  ;;  %v3397_v20 = vld [vmem:[%s4697_s1 + $0x644] ss:$16 sps:$4 sm:$0xff]   ;;  %v3400_v21 = vld [vmem:[%s4697_s1 + $0x64c] ss:$16 sps:$4 sm:$0xff]  }
  0x8c   :  { %1508 = vmatprep.subr.bf16.mxu0 %v3307_v22  ;;  %1672 = vmatprep.subr.bf16.mxu1 %v3310_v23  ;;  %v3395_v22 = vld [vmem:[%s4697_s1 + $0x640] ss:$16 sps:$4 sm:$0xff]   ;;  %v3398_v23 = vld [vmem:[%s4697_s1 + $0x648] ss:$16 sps:$4 sm:$0xff]  }
  0x8f   :  { %1509 = vmatpush1.bf16.msra.mxu0 %v3305_v24  ;;  %1673 = vmatpush1.bf16.msra.mxu1 %v3308_v25  ;;  %v3583_v24 = vmov 0   ;;  %v3403_v25 = vld [vmem:[%s4697_s1 + $0x664] ss:$16 sps:$4 sm:$0xff]  }
  0x90   :  { %1510 = vmatprep.subr.bf16.mxu0 %v3313_v26  ;;  %1674 = vmatprep.subr.bf16.mxu1 %v3316_v27  ;;  %v3406_v26 = vld [vmem:[%s4697_s1 + $0x66c] ss:$16 sps:$4 sm:$0xff]   ;;  %v3401_v27 = vld [vmem:[%s4697_s1 + $0x660] ss:$16 sps:$4 sm:$0xff]  }
  0x93   :  { %1511 = vmatpush1.bf16.msra.mxu0 %v3311_v28  ;;  %1675 = vmatpush1.bf16.msra.mxu1 %v3314_v29  ;;  %v3404_v28 = vld [vmem:[%s4697_s1 + $0x668] ss:$16 sps:$4 sm:$0xff]  }
  0x94   :  { %1512 = vmatprep.subr.bf16.mxu0 %v3319_v30  ;;  %1676 = vmatprep.subr.bf16.mxu1 %v3322_v31 }
  0x97   :  { %1513 = vmatpush1.bf16.msra.mxu0 %v3317_v32  ;;  %1677 = vmatpush1.bf16.msra.mxu1 %v3320_v33 }
  0x98   :  { %1514 = vmatprep.subr.bf16.mxu0 %v3325_v34  ;;  %1678 = vmatprep.subr.bf16.mxu1 %v3328_v35 }
  0x9b   :  { %1515 = vmatpush1.bf16.msra.mxu0 %v3323_v36  ;;  %1679 = vmatpush1.bf16.msra.mxu1 %v3326_v37 }
  0x9c   :  { %1516 = vmatprep.subr.bf16.mxu0 %v3331_v38  ;;  %1680 = vmatprep.subr.bf16.mxu1 %v3334_v39 }
  0x9f   :  { %1517 = vmatpush1.bf16.msra.mxu0 %v3329_v40  ;;  %1681 = vmatpush1.bf16.msra.mxu1 %v3332_v41 }
  0xa0   :  { %1518 = vmatprep.subr.bf16.mxu0 %v3337_v42  ;;  %1682 = vmatprep.subr.bf16.mxu1 %v3340_v43 }
  0xa3   :  { %1519 = vmatpush1.bf16.msra.mxu0 %v3335_v44  ;;  %1683 = vmatpush1.bf16.msra.mxu1 %v3338_v45 }
  0xa4   :  { %1520 = vmatprep.subr.bf16.mxu0 %v3343_v46  ;;  %1684 = vmatprep.subr.bf16.mxu1 %v3346_v47 }
  0xa7   :  { %1521 = vmatpush1.bf16.msra.mxu0 %v3341_v48  ;;  %1685 = vmatpush1.bf16.msra.mxu1 %v3344_v49 }
  0xa8   :  { %1522 = vmatprep.subr.bf16.mxu0 %v3349_v50  ;;  %1686 = vmatprep.subr.bf16.mxu1 %v3352_v51 }
  0xab   :  { %1523 = vmatpush1.bf16.msra.mxu0 %v3347_v52  ;;  %1687 = vmatpush1.bf16.msra.mxu1 %v3350_v53 }
  0xac   :  { %1524 = vmatprep.subr.bf16.mxu0 %v3355_v54  ;;  %1688 = vmatprep.subr.bf16.mxu1 %v3358_v55 }
  0xaf   :  { %1525 = vmatpush1.bf16.msra.mxu0 %v3353_v56  ;;  %1689 = vmatpush1.bf16.msra.mxu1 %v3356_v57 }
  0xb0   :  { %1526 = vmatprep.subr.bf16.mxu0 %v3361_v58  ;;  %1690 = vmatprep.subr.bf16.mxu1 %v3364_v59 }
  0xb3   :  { %1527 = vmatpush1.bf16.msra.mxu0 %v3359_v60  ;;  %1691 = vmatpush1.bf16.msra.mxu1 %v3362_v61 }
  0xb4   :  { %1528 = vmatprep.subr.bf16.mxu0 %v3367_v62  ;;  %1692 = vmatprep.subr.bf16.mxu1 %v3370_v63 }
  0xb7   :  { %1529 = vmatpush1.bf16.msra.mxu0 %v3365_v0  ;;  %1693 = vmatpush1.bf16.msra.mxu1 %v3368_v1 }
  0xb8   :  { %1530 = vmatprep.subr.bf16.mxu0 %v3373_v2  ;;  %1694 = vmatprep.subr.bf16.mxu1 %v3376_v3 }
  0xbb   :  { %1531 = vmatpush1.bf16.msra.mxu0 %v3371_v4  ;;  %1695 = vmatpush1.bf16.msra.mxu1 %v3374_v5 }
  0xbc   :  { %1532 = vmatprep.subr.bf16.mxu0 %v3379_v6  ;;  %1696 = vmatprep.subr.bf16.mxu1 %v3382_v7 }
  0xbf   :  { %1533 = vmatpush1.bf16.msra.mxu0 %v3377_v8  ;;  %1697 = vmatpush1.bf16.msra.mxu1 %v3380_v9 }
  0xc0   :  { %1543 = vmatprep.subr.bf16.mxu0 %v3385_v11  ;;  %1707 = vmatprep.subr.bf16.mxu1 %v3388_v12 }
  0xc2   :  { %1535 = vmatmul.mubr.bf16.vlgmr.msra.gmra.mrb[0].mxu0 %v51_v15  ;;  %1699 = vmatmul.mubr.bf16.vlgmr.msra.gmra.mrb[0].mxu1 %v51_v15 }
  0xc3   :  { %1544 = vmatpush1.bf16.msra.mxu0 %v3383_v13  ;;  %1708 = vmatpush1.bf16.msra.mxu1 %v3386_v14 }
  0xc4   :  { %1545 = vmatprep.subr.bf16.mxu0 %v3391_v16  ;;  %1709 = vmatprep.subr.bf16.mxu1 %v3394_v17 }
  0xc5   :  { %1575 = vmatprep.mubr.bf16.mxu0 %v3583_v24  ;;  %1739 = vmatprep.mubr.bf16.mxu1 %v3583_v24 }
  0xc7   :  { %1546 = vmatpush1.bf16.msra.mxu0 %v3389_v18  ;;  %1710 = vmatpush1.bf16.msra.mxu1 %v3392_v19 }
  0xc8   :  { %1547 = vmatprep.subr.bf16.mxu0 %v3397_v20  ;;  %1711 = vmatprep.subr.bf16.mxu1 %v3400_v21 }
  0xcb   :  { %1548 = vmatpush1.bf16.msra.mxu0 %v3395_v22  ;;  %1712 = vmatpush1.bf16.msra.mxu1 %v3398_v23 }
  0xcc   :  { %16 = vsyncpa [#allocation3], 0  ;;  %1549 = vmatprep.subr.bf16.mxu0 %v3403_v25  ;;  %1713 = vmatprep.subr.bf16.mxu1 %v3406_v26  ;;  %v3409_v29 = vld [vmem:[%s4697_s1 + $0x684] ss:$16 sps:$4 sm:$0xff]   ;;  %v3412_v30 = vld [vmem:[%s4697_s1 + $0x68c] ss:$16 sps:$4 sm:$0xff]  }
  0xcd   :  { %v3407_v31 = vld [vmem:[%s4697_s1 + $0x680] ss:$16 sps:$4 sm:$0xff]   ;;  %v3410_v32 = vld [vmem:[%s4697_s1 + $0x688] ss:$16 sps:$4 sm:$0xff]   ;;  %v3415_v33 = vld [vmem:[%s4697_s1 + $0x6a4] ss:$16 sps:$4 sm:$0xff]  }
  0xce   :  { %v3418_v34 = vld [vmem:[%s4697_s1 + $0x6ac] ss:$16 sps:$4 sm:$0xff]   ;;  %v3413_v35 = vld [vmem:[%s4697_s1 + $0x6a0] ss:$16 sps:$4 sm:$0xff]   ;;  %v3416_v36 = vld [vmem:[%s4697_s1 + $0x6a8] ss:$16 sps:$4 sm:$0xff]  }
  0xcf   :  { %1550 = vmatpush1.bf16.msra.mxu0 %v3401_v27  ;;  %1714 = vmatpush1.bf16.msra.mxu1 %v3404_v28  ;;  %v3421_v37 = vld [vmem:[%s4697_s1 + $0x6c4] ss:$16 sps:$4 sm:$0xff]   ;;  %v3424_v38 = vld [vmem:[%s4697_s1 + $0x6cc] ss:$16 sps:$4 sm:$0xff]   ;;  %v3419_v39 = vld [vmem:[%s4697_s1 + $0x6c0] ss:$16 sps:$4 sm:$0xff]   ;;  %v280_v28 = vlaneseq }
  0xd0   :  { %1551 = vmatprep.subr.bf16.mxu0 %v3409_v29  ;;  %1715 = vmatprep.subr.bf16.mxu1 %v3412_v30  ;;  %v3422_v40 = vld [vmem:[%s4697_s1 + $0x6c8] ss:$16 sps:$4 sm:$0xff]   ;;  %v3427_v41 = vld [vmem:[%s4697_s1 + $0x6e4] ss:$16 sps:$4 sm:$0xff]   ;;  %v3430_v42 = vld [vmem:[%s4697_s1 + $0x6ec] ss:$16 sps:$4 sm:$0xff]  }
  0xd1   :  { %v3425_v43 = vld [vmem:[%s4697_s1 + $0x6e0] ss:$16 sps:$4 sm:$0xff]   ;;  %v3428_v44 = vld [vmem:[%s4697_s1 + $0x6e8] ss:$16 sps:$4 sm:$0xff]   ;;  %v3433_v46 = vld [vmem:[%s4699_s3 + $0x4] ss:$8 sps:$4 sm:$0xff]  }
  0xd2   :  { %v46_v45 = vld [vmem:[%s4696_s0 + $0x30] sm:$0xff]  ;;  %v3431_v48 = vld [vmem:[%s4699_s3] ss:$8 sps:$4 sm:$0xff]   ;;  %v3439_v51 = vld [vmem:[%s4699_s3 + $0x24] ss:$8 sps:$4 sm:$0xff]   ;;  %v4475_v29 = vshrl.u32 %v280_v28, 7 }
  0xd3   :  { %1552 = vmatpush1.bf16.msra.mxu0 %v3407_v31  ;;  %1716 = vmatpush1.bf16.msra.mxu1 %v3410_v32  ;;  %v53_v47 = vpack.c.bf16 %v46_v45, %v46_v45  ;;  %v3436_v49 = vld [vmem:[%s4699_s3 + $0x14] ss:$8 sps:$4 sm:$0xff]   ;;  %v3434_v50 = vld [vmem:[%s4699_s3 + $0x10] ss:$8 sps:$4 sm:$0xff]   ;;  %v3437_v52 = vld [vmem:[%s4699_s3 + $0x20] ss:$8 sps:$4 sm:$0xff]  }
  0xd4   :  { %1553 = vmatprep.subr.bf16.mxu0 %v3415_v33  ;;  %1717 = vmatprep.subr.bf16.mxu1 %v3418_v34  ;;  %v3442_v53 = vld [vmem:[%s4699_s3 + $0x34] ss:$8 sps:$4 sm:$0xff]   ;;  %v3440_v54 = vld [vmem:[%s4699_s3 + $0x30] ss:$8 sps:$4 sm:$0xff]   ;;  %v3445_v55 = vld [vmem:[%s4699_s3 + $0x44] ss:$8 sps:$4 sm:$0xff]  }
  0xd5   :  { %v3443_v56 = vld [vmem:[%s4699_s3 + $0x40] ss:$8 sps:$4 sm:$0xff]   ;;  %v3448_v57 = vld [vmem:[%s4699_s3 + $0x54] ss:$8 sps:$4 sm:$0xff]   ;;  %v3446_v58 = vld [vmem:[%s4699_s3 + $0x50] ss:$8 sps:$4 sm:$0xff]  }
  0xd6   :  { %v3451_v59 = vld [vmem:[%s4699_s3 + $0x64] ss:$8 sps:$4 sm:$0xff]   ;;  %v3449_v60 = vld [vmem:[%s4699_s3 + $0x60] ss:$8 sps:$4 sm:$0xff]   ;;  %v3454_v61 = vld [vmem:[%s4699_s3 + $0x74] ss:$8 sps:$4 sm:$0xff]  }
  0xd7   :  { %1554 = vmatpush1.bf16.msra.mxu0 %v3413_v35  ;;  %1718 = vmatpush1.bf16.msra.mxu1 %v3416_v36  ;;  %v3452_v62 = vld [vmem:[%s4699_s3 + $0x70] ss:$8 sps:$4 sm:$0xff]   ;;  %v3457_v63 = vld [vmem:[%s4699_s3 + $0x84] ss:$8 sps:$4 sm:$0xff]   ;;  %v3455_v0 = vld [vmem:[%s4699_s3 + $0x80] ss:$8 sps:$4 sm:$0xff]  }
  0xd8   :  { %1555 = vmatprep.subr.bf16.mxu0 %v3421_v37  ;;  %1719 = vmatprep.subr.bf16.mxu1 %v3424_v38  ;;  %v3460_v1 = vld [vmem:[%s4699_s3 + $0x94] ss:$8 sps:$4 sm:$0xff]   ;;  %v3458_v2 = vld [vmem:[%s4699_s3 + $0x90] ss:$8 sps:$4 sm:$0xff]   ;;  %v3463_v3 = vld [vmem:[%s4699_s3 + $0xa4] ss:$8 sps:$4 sm:$0xff]  }
  0xd9   :  { %v3461_v4 = vld [vmem:[%s4699_s3 + $0xa0] ss:$8 sps:$4 sm:$0xff]   ;;  %v3466_v5 = vld [vmem:[%s4699_s3 + $0xb4] ss:$8 sps:$4 sm:$0xff]   ;;  %v3464_v6 = vld [vmem:[%s4699_s3 + $0xb0] ss:$8 sps:$4 sm:$0xff]  }
  0xda   :  { %v3469_v7 = vld [vmem:[%s4699_s3 + $0xc4] ss:$8 sps:$4 sm:$0xff]   ;;  %v3467_v8 = vld [vmem:[%s4699_s3 + $0xc0] ss:$8 sps:$4 sm:$0xff]   ;;  %v3472_v9 = vld [vmem:[%s4699_s3 + $0xd4] ss:$8 sps:$4 sm:$0xff]  }
  0xdb   :  { %1556 = vmatpush1.bf16.msra.mxu0 %v3419_v39  ;;  %1720 = vmatpush1.bf16.msra.mxu1 %v3422_v40  ;;  %v3470_v10 = vld [vmem:[%s4699_s3 + $0xd0] ss:$8 sps:$4 sm:$0xff]   ;;  %v3475_v11 = vld [vmem:[%s4699_s3 + $0xe4] ss:$8 sps:$4 sm:$0xff]   ;;  %v3473_v12 = vld [vmem:[%s4699_s3 + $0xe0] ss:$8 sps:$4 sm:$0xff]  }
  0xdc   :  { %1557 = vmatprep.subr.bf16.mxu0 %v3427_v41  ;;  %1721 = vmatprep.subr.bf16.mxu1 %v3430_v42  ;;  %v3478_v13 = vld [vmem:[%s4699_s3 + $0xf4] ss:$8 sps:$4 sm:$0xff]   ;;  %v3476_v14 = vld [vmem:[%s4699_s3 + $0xf0] ss:$8 sps:$4 sm:$0xff]   ;;  %v3481_v15 = vld [vmem:[%s4699_s3 + $0x104] ss:$8 sps:$4 sm:$0xff]  }
  0xdd   :  { %v3527_v16 = vld [vmem:[%s4701_s5 + $0x40] sm:$0xff]   ;;  %v3529_v18 = vld [vmem:[%s4701_s5 + $0x48] sm:$0xff]   ;;  %v3531_v20 = vld [vmem:[%s4701_s5 + $0x50] sm:$0xff]   ;;  %v282_v30 = vsub.s32 0, %v4475_v29  ;;  %v286_v32 = vsub.s32 1, %v4475_v29  ;;  %v294_v33 = vsub.s32 3, %v4475_v29 }
  0xde   :  { %v3528_v17 = vld [vmem:[%s4701_s5] sm:$0xff]   ;;  %v3530_v19 = vld [vmem:[%s4701_s5 + $0x8] sm:$0xff]   ;;  %v3532_v21 = vld [vmem:[%s4701_s5 + $0x10] sm:$0xff]   ;;  %vm3585_vm0 = vmmov 0   ;;  %s3586_s23 = smov [#allocation2]  }
  0xdf   :  { %1558 = vmatpush1.bf16.msra.mxu0 %v3425_v43  ;;  %1722 = vmatpush1.bf16.msra.mxu1 %v3428_v44  ;;  %v3533_v22 = vld [vmem:[%s4701_s5 + $0x58] sm:$0xff]   ;;  %v3535_v24 = vld [vmem:[%s4701_s5 + $0x60] sm:$0xff]   ;;  %v3537_v26 = vld [vmem:[%s4701_s5 + $0x68] sm:$0xff]   ;;  %s2646_s24 = sshll.u32 %s3586_s23, 4  ;;  %s2647_s24 = int_to_ptr.vmem [resolvable:$true] %s2646_s24 }
  0xe0   :  { %2152 = vmatprep.subr.bf16.mxu0 %v3433_v46  ;;  %2977 = vmatprep.subr.bf16.mxu1 %v3527_v16  ;;  %v3534_v23 = vld [vmem:[%s4701_s5 + $0x18] sm:$0xff]   ;;  %v3536_v25 = vld [vmem:[%s4701_s5 + $0x20] sm:$0xff]   ;;  %v3538_v27 = vld [vmem:[%s4701_s5 + $0x28] sm:$0xff]   ;;  %p3564_p1 = scmp.lt.s32.totalorder %s2647_s24, %s2647_s24 }
  0xe1   :  { %v4481_v31 = vld [vmem:[%s4698_s2] sm:$0xf]  ;;  %v3520_v16 = vld [vmem:[%s4699_s3 + $0x1d4] ss:$8 sps:$4 sm:$0xff]  }
  0xe2   :  { %1576 = vmatmul.mubr.bf16.vlgmr.msra.gmra.mrb[0].mxu0 %v53_v47  ;;  %1740 = vmatmul.mubr.bf16.vlgmr.msra.gmra.mrb[0].mxu1 %v53_v47  ;;  %v283_v34 = vrot.slane %v4481_v31, %v282_v30  ;;  %v287_v35 = vrot.slane %v4481_v31, %v286_v32  ;;  %v295_v36 = vrot.slane %v4481_v31, %v294_v33  ;;  %v3541_v28 = vld [vmem:[%s4701_s5 + $0x78] sm:$0xff]   ;;  %v3584_v33 = vmov 0.0  }
  0xe3   :  { %2153 = vmatpush1.bf16.msra.mxu0 %v3431_v48  ;;  %2978 = vmatpush3.bf16.msra.mxu1 %v3528_v17  ;;  %v3518_v17 = vld [vmem:[%s4699_s3 + $0x1d0] ss:$8 sps:$4 sm:$0xff]  }
  0xe4   :  { %2154 = vmatprep.subr.bf16.mxu0 %v3436_v49  ;;  %2979 = vmatprep.subr.bf16.mxu1 %v3529_v18 }
  0xe7   :  { %2155 = vmatpush1.bf16.msra.mxu0 %v3434_v50  ;;  %2980 = vmatpush3.bf16.msra.mxu1 %v3530_v19  ;;  %v3523_v19 = vld [vmem:[%s4699_s3 + $0x1e4] ss:$8 sps:$4 sm:$0xff]  }
  0xe8   :  { %2156 = vmatprep.subr.bf16.mxu0 %v3439_v51  ;;  %2981 = vmatprep.subr.bf16.mxu1 %v3531_v20  ;;  %v3521_v20 = vld [vmem:[%s4699_s3 + $0x1e0] ss:$8 sps:$4 sm:$0xff]  }
  0xeb   :  { %2157 = vmatpush1.bf16.msra.mxu0 %v3437_v52  ;;  %2982 = vmatpush3.bf16.msra.mxu1 %v3532_v21  ;;  %v3479_v52 = vld [vmem:[%s4699_s3 + $0x100] ss:$8 sps:$4 sm:$0xff]  }
  0xec   :  { %2158 = vmatprep.subr.bf16.mxu0 %v3442_v53  ;;  %2983 = vmatprep.subr.bf16.mxu1 %v3533_v22  ;;  %v3526_v22 = vld [vmem:[%s4699_s3 + $0x1f4] ss:$8 sps:$4 sm:$0xff]  }
  0xef   :  { %2159 = vmatpush1.bf16.msra.mxu0 %v3440_v54  ;;  %2984 = vmatpush3.bf16.msra.mxu1 %v3534_v23  ;;  %v3484_v54 = vld [vmem:[%s4699_s3 + $0x114] ss:$8 sps:$4 sm:$0xff]   ;;  %v3524_v23 = vld [vmem:[%s4699_s3 + $0x1f0] ss:$8 sps:$4 sm:$0xff]  }
  0xf0   :  { %2160 = vmatprep.subr.bf16.mxu0 %v3445_v55  ;;  %2985 = vmatprep.subr.bf16.mxu1 %v3535_v24 }
  0xf3   :  { %2161 = vmatpush1.bf16.msra.mxu0 %v3443_v56  ;;  %2986 = vmatpush3.bf16.msra.mxu1 %v3536_v25  ;;  %v3482_v56 = vld [vmem:[%s4699_s3 + $0x110] ss:$8 sps:$4 sm:$0xff]  }
  0xf4   :  { %2162 = vmatprep.subr.bf16.mxu0 %v3448_v57  ;;  %2987 = vmatprep.subr.bf16.mxu1 %v3537_v26  ;;  %v3487_v57 = vld [vmem:[%s4699_s3 + $0x124] ss:$8 sps:$4 sm:$0xff]   ;;  %v3539_v26 = vld [vmem:[%s4701_s5 + $0x70] sm:$0xff]  }
  0xf7   :  { %2163 = vmatpush1.bf16.msra.mxu0 %v3446_v58  ;;  %2988 = vmatpush3.bf16.msra.mxu1 %v3538_v27  ;;  %v3485_v58 = vld [vmem:[%s4699_s3 + $0x120] ss:$8 sps:$4 sm:$0xff]   ;;  %v3540_v27 = vld [vmem:[%s4701_s5 + $0x30] sm:$0xff]  }
  0xf8   :  { %2164 = vmatprep.subr.bf16.mxu0 %v3451_v59  ;;  %v3490_v59 = vld [vmem:[%s4699_s3 + $0x134] ss:$8 sps:$4 sm:$0xff]   ;;  %2989 = vmatprep.subr.bf16.mxu1 %v3539_v26 }
  0xfb   :  { %2165 = vmatpush1.bf16.msra.mxu0 %v3449_v60  ;;  %v3488_v60 = vld [vmem:[%s4699_s3 + $0x130] ss:$8 sps:$4 sm:$0xff]   ;;  %2990 = vmatpush3.bf16.msra.mxu1 %v3540_v27 }
  0xfc   :  { %2166 = vmatprep.subr.bf16.mxu0 %v3454_v61  ;;  %v3493_v61 = vld [vmem:[%s4699_s3 + $0x144] ss:$8 sps:$4 sm:$0xff]   ;;  %2991 = vmatprep.subr.bf16.mxu1 %v3541_v28 }
  0xff   :  { %2167 = vmatpush1.bf16.msra.mxu0 %v3452_v62  ;;  %v3491_v62 = vld [vmem:[%s4699_s3 + $0x140] ss:$8 sps:$4 sm:$0xff]  }
 0x100   :  { %2168 = vmatprep.subr.bf16.mxu0 %v3457_v63  ;;  %v3496_v63 = vld [vmem:[%s4699_s3 + $0x154] ss:$8 sps:$4 sm:$0xff]  }
 0x103   :  { %2169 = vmatpush1.bf16.msra.mxu0 %v3455_v0  ;;  %v3494_v0 = vld [vmem:[%s4699_s3 + $0x150] ss:$8 sps:$4 sm:$0xff]  }
 0x104   :  { %2170 = vmatprep.subr.bf16.mxu0 %v3460_v1  ;;  %v3499_v1 = vld [vmem:[%s4699_s3 + $0x164] ss:$8 sps:$4 sm:$0xff]  }
 0x107   :  { %2171 = vmatpush1.bf16.msra.mxu0 %v3458_v2  ;;  %v3497_v2 = vld [vmem:[%s4699_s3 + $0x160] ss:$8 sps:$4 sm:$0xff]  }
 0x108   :  { %2172 = vmatprep.subr.bf16.mxu0 %v3463_v3  ;;  %v3502_v3 = vld [vmem:[%s4699_s3 + $0x174] ss:$8 sps:$4 sm:$0xff]  }
 0x10b   :  { %2173 = vmatpush1.bf16.msra.mxu0 %v3461_v4  ;;  %v3500_v4 = vld [vmem:[%s4699_s3 + $0x170] ss:$8 sps:$4 sm:$0xff]  }
 0x10c   :  { %2174 = vmatprep.subr.bf16.mxu0 %v3466_v5  ;;  %v3505_v5 = vld [vmem:[%s4699_s3 + $0x184] ss:$8 sps:$4 sm:$0xff]  }
 0x10f   :  { %2175 = vmatpush1.bf16.msra.mxu0 %v3464_v6  ;;  %v3503_v6 = vld [vmem:[%s4699_s3 + $0x180] ss:$8 sps:$4 sm:$0xff]  }
 0x110   :  { %2176 = vmatprep.subr.bf16.mxu0 %v3469_v7  ;;  %v3508_v7 = vld [vmem:[%s4699_s3 + $0x194] ss:$8 sps:$4 sm:$0xff]  }
 0x113   :  { %2177 = vmatpush1.bf16.msra.mxu0 %v3467_v8  ;;  %v3506_v8 = vld [vmem:[%s4699_s3 + $0x190] ss:$8 sps:$4 sm:$0xff]  }
 0x114   :  { %2178 = vmatprep.subr.bf16.mxu0 %v3472_v9  ;;  %v3511_v9 = vld [vmem:[%s4699_s3 + $0x1a4] ss:$8 sps:$4 sm:$0xff]  }
 0x117   :  { %2179 = vmatpush1.bf16.msra.mxu0 %v3470_v10  ;;  %v3509_v10 = vld [vmem:[%s4699_s3 + $0x1a0] ss:$8 sps:$4 sm:$0xff]  }
 0x118   :  { %2180 = vmatprep.subr.bf16.mxu0 %v3475_v11  ;;  %v3514_v11 = vld [vmem:[%s4699_s3 + $0x1b4] ss:$8 sps:$4 sm:$0xff]  }
 0x11b   :  { %2181 = vmatpush1.bf16.msra.mxu0 %v3473_v12  ;;  %v3512_v12 = vld [vmem:[%s4699_s3 + $0x1b0] ss:$8 sps:$4 sm:$0xff]  }
 0x11c   :  { %2182 = vmatprep.subr.bf16.mxu0 %v3478_v13  ;;  %v3517_v13 = vld [vmem:[%s4699_s3 + $0x1c4] ss:$8 sps:$4 sm:$0xff]  }
 0x11f   :  { %2183 = vmatpush1.bf16.msra.mxu0 %v3476_v14  ;;  %v3515_v14 = vld [vmem:[%s4699_s3 + $0x1c0] ss:$8 sps:$4 sm:$0xff]  }
 0x120   :  { %2193 = vmatprep.subr.bf16.mxu0 %v3481_v15  ;;  %v290_v15 = vsub.s32 2, %v4475_v29  ;;  %v3544_v29 = vld [vmem:[%s4703_s7 + $0x8] sm:$0xff]  }
 0x122   :  { %v291_v18 = vrot.slane %v4481_v31, %v290_v15  ;;  %v3542_v31 = vld [vmem:[%s4701_s5 + $0x38] sm:$0xff]  }
 0x123   :  { %2992 = vmatpush3.bf16.msra.mxu1 %v3542_v31 }
 0x124   :  { %3017 = vmatprep.subr.bf16.mxu1 %v3584_v33 }
 0x1b5   :  { %v1577_v37 = vpop.f32.mrb[0].mxu0  ;;  %v4492_v38 = vpop.f32.mrb[0].mxu1 }
 0x1b6   :  { %v3057_v39 = vadd.f32 %v1577_v37, %v283_v34  ;;  %v1579_v40 = vpop.f32.mrb[1].mxu0  ;;  %v1743_v41 = vpop.f32.mrb[1].mxu1  ;;  %v3059_v21 = vadd.f32 %v4492_v38, %v291_v18  ;;  %v1820_v34 = vld [vmem:[%s4700_s4] sm:$0x3] }
 0x1b7   :  { %v3058_v42 = vadd.f32 %v1579_v40, %v287_v35  ;;  %v3060_v43 = vadd.f32 %v1743_v41, %v295_v36  ;;  %v1581_v44 = vpop.f32.mrb[2].mxu0  ;;  %v1745_v45 = vpop.f32.mrb[2].mxu1  ;;  %v1825_v35 = vrot.slane %v1820_v34, %v282_v30  ;;  %v1829_v36 = vrot.slane %v1820_v34, %v286_v32  ;;  %v3545_v30 = vld [vmem:[%s4703_s7 + $0x10] sm:$0xff]   ;;  %v3546_v32 = vld [vmem:[%s4703_s7 + $0x18] sm:$0xff]  }
 0x1b8   :  { %v1748_v46 = vmax.f32 %v3057_v39, 0.0  ;;  %v1582_v47 = vpop.f32.mrb[3].mxu0  ;;  %v1746_v48 = vpop.f32.mrb[3].mxu1  ;;  %v1750_v24 = vmax.f32 %v3059_v21, 0.0 }
 0x1b9   :  { %v1749_v49 = vmax.f32 %v3058_v42, 0.0  ;;  %v1751_v50 = vmax.f32 %v3060_v43, 0.0  ;;  %v3547_v48 = vld [vmem:[%s4703_s7 + $0x20] sm:$0xff]  }
 0x1ba   :  { %v1752_v53 = vpack.c.bf16 %v1748_v46, %v1748_v46  ;;  %v1754_v25 = vpack.c.bf16 %v1750_v24, %v1750_v24  ;;  %v3543_v46 = vld [vmem:[%s4703_s7] sm:$0xff]  }
 0x1bb   :  { %v1753_v51 = vpack.c.bf16 %v1749_v49, %v1749_v49  ;;  %v1755_v55 = vpack.c.bf16 %v1751_v50, %v1751_v50  ;;  %v3548_v49 = vld [vmem:[%s4703_s7 + $0x28] sm:$0xff]   ;;  %v3549_v50 = vld [vmem:[%s4703_s7 + $0x30] sm:$0xff]  }
 0x1bd   :  { %2184 = vmatprep.mubr.bf16.mxu0 %v1753_v51  ;;  %v3550_v51 = vld [vmem:[%s4703_s7 + $0x38] sm:$0xff]  }
 0x1be   :  { %2185 = vmatmul.mubr.bf16.vlgmr.msra.gmra.mrb[4].mxu0 %v1752_v53  ;;  %v2942_v53 = vld [vmem:[%s4702_s6] ss:$0 sm:$0xff] }
 0x1bf   :  { %2194 = vmatpush1.bf16.msra.mxu0 %v3479_v52  ;;  %2225 = vmatprep.mubr.bf16.mxu0 %v1755_v55 }
 0x1c0   :  { %2195 = vmatprep.subr.bf16.mxu0 %v3484_v54 }
 0x1c3   :  { %2196 = vmatpush1.bf16.msra.mxu0 %v3482_v56 }
 0x1c4   :  { %2197 = vmatprep.subr.bf16.mxu0 %v3487_v57 }
 0x1c7   :  { %2198 = vmatpush1.bf16.msra.mxu0 %v3485_v58 }
 0x1c8   :  { %2199 = vmatprep.subr.bf16.mxu0 %v3490_v59 }
 0x1cb   :  { %2200 = vmatpush1.bf16.msra.mxu0 %v3488_v60  ;;  %v3551_v60 = vld [vmem:[%s4705_s9] sm:$0xff]  }
 0x1cc   :  { %2201 = vmatprep.subr.bf16.mxu0 %v3493_v61 }
 0x1cf   :  { %2202 = vmatpush1.bf16.msra.mxu0 %v3491_v62  ;;  %v3552_v62 = vld [vmem:[%s4705_s9 + $0x8] sm:$0xff]  }
 0x1d0   :  { %2203 = vmatprep.subr.bf16.mxu0 %v3496_v63  ;;  %v3553_v63 = vld [vmem:[%s4705_s9 + $0x10] sm:$0xff]  }
 0x1d3   :  { %2204 = vmatpush1.bf16.msra.mxu0 %v3494_v0  ;;  %v3554_v0 = vld [vmem:[%s4705_s9 + $0x18] sm:$0xff]  }
 0x1d4   :  { %2205 = vmatprep.subr.bf16.mxu0 %v3499_v1  ;;  %v3555_v1 = vld [vmem:[%s4705_s9 + $0x20] sm:$0xff]  }
 0x1d7   :  { %2206 = vmatpush1.bf16.msra.mxu0 %v3497_v2  ;;  %v3556_v2 = vld [vmem:[%s4705_s9 + $0x28] sm:$0xff]  }
 0x1d8   :  { %2207 = vmatprep.subr.bf16.mxu0 %v3502_v3  ;;  %v3557_v3 = vld [vmem:[%s4705_s9 + $0x30] sm:$0xff]  }
 0x1db   :  { %2208 = vmatpush1.bf16.msra.mxu0 %v3500_v4  ;;  %v3558_v4 = vld [vmem:[%s4705_s9 + $0x38] sm:$0xff]  }
 0x1dc   :  { %2209 = vmatprep.subr.bf16.mxu0 %v3505_v5  ;;  %v2959_v5 = vld [vmem:[%s4704_s8] ss:$0 sm:$0xff]  ;;  %s3559_s8 = scalar_lea.vmem %s2647_s24, 128 }
 0x1dd   :  { %p3560_p0 = scmp.ne.s32.totalorder %s2647_s24, %s3559_s8  ;;  %p3565_p2 = scmp.lt.s32.totalorder %s3559_s8, %s3559_s8 }
 0x1df   :  { %2210 = vmatpush1.bf16.msra.mxu0 %v3503_v6  ;;  %p3566_p3 = por %p3565_p2, %p3564_p1 }
 0x1e0   :  { %2211 = vmatprep.subr.bf16.mxu0 %v3508_v7 }
 0x1e1   :  { %p3567_p4 = pnand %p3566_p3, %p3560_p0 }
 0x1e3   :  { %2212 = vmatpush1.bf16.msra.mxu0 %v3506_v8 }
 0x1e4   :  { %2213 = vmatprep.subr.bf16.mxu0 %v3511_v9 }
 0x1e7   :  { %2214 = vmatpush1.bf16.msra.mxu0 %v3509_v10 }
 0x1e8   :  { %2215 = vmatprep.subr.bf16.mxu0 %v3514_v11 }
 0x1eb   :  { %2216 = vmatpush1.bf16.msra.mxu0 %v3512_v12 }
 0x1ec   :  { %2217 = vmatprep.subr.bf16.mxu0 %v3517_v13  ;;  %v2968_v13 = vld [vmem:[%s4706_s10] ss:$0 sm:$0xff] }
 0x1ef   :  { %2218 = vmatpush1.bf16.msra.mxu0 %v3515_v14 }
 0x1f0   :  { %2219 = vmatprep.subr.bf16.mxu0 %v3520_v16 }
 0x1f3   :  { %2220 = vmatpush1.bf16.msra.mxu0 %v3518_v17 }
 0x1f4   :  { %2221 = vmatprep.subr.bf16.mxu0 %v3523_v19 }
 0x1f7   :  { %2222 = vmatpush1.bf16.msra.mxu0 %v3521_v20 }
 0x1f8   :  { %2223 = vmatprep.subr.bf16.mxu0 %v3526_v22 }
 0x1fb   :  { %2224 = vmatpush1.bf16.msra.mxu0 %v3524_v23 }
 0x1fe   :  { %2226 = vmatmul.mubr.bf16.vlgmr.msra.gmra.mrb[4].mxu0 %v1754_v25 }
 0x2d1   :  { %v2227_v37 = vpop.f32.mrb[4].mxu0 }
 0x2d2   :  { %v3061_v38 = vadd.f32 %v2227_v37, %v1825_v35  ;;  %v2229_v39 = vpop.f32.mrb[5].mxu0 }
 0x2d3   :  { %v3062_v40 = vadd.f32 %v2229_v39, %v1829_v36  ;;  %v2231_v41 = vpop.f32.mrb[6].mxu0 }
 0x2d4   :  { %v2234_v42 = vmax.f32 %v3061_v38, 0.0  ;;  %v2232_v43 = vpop.f32.mrb[7].mxu0 }
 0x2d5   :  { %v2235_v44 = vmax.f32 %v3062_v40, 0.0 }
 0x2d6   :  { %v2236_v47 = vpack.c.bf16 %v2234_v42, %v2234_v42 }
 0x2d7   :  { %v2237_v45 = vpack.c.bf16 %v2235_v44, %v2235_v44 }
 0x2d9   :  { %2405 = vmatprep.mubr.bf16.mxu1 %v2237_v45 }
 0x2da   :  { %2406 = vmatmul.mubr.bf16.vlgmr.msra.gmra.mrb[4].mxu1 %v2236_v47 }
 0x2db   :  { %3018 = vmatpush3.bf16.msra.mxu1 %v3543_v46  ;;  %3033 = vmatprep.mubr.msk.bf16.mxu1 %vm3585_vm0, %v3584_v33 }
 0x2dc   :  { %3019 = vmatprep.subr.bf16.mxu1 %v3584_v33 }
 0x2df   :  { %3020 = vmatpush3.bf16.msra.mxu1 %v3544_v29 }
 0x2e0   :  { %3021 = vmatprep.subr.bf16.mxu1 %v3584_v33 }
 0x2e3   :  { %3022 = vmatpush3.bf16.msra.mxu1 %v3545_v30 }
 0x2e4   :  { %3023 = vmatprep.subr.bf16.mxu1 %v3584_v33 }
 0x2e7   :  { %3024 = vmatpush3.bf16.msra.mxu1 %v3546_v32 }
 0x2e8   :  { %3025 = vmatprep.subr.bf16.mxu1 %v3584_v33 }
 0x2eb   :  { %3026 = vmatpush3.bf16.msra.mxu1 %v3547_v48 }
 0x2ec   :  { %3027 = vmatprep.subr.bf16.mxu1 %v3584_v33 }
 0x2ef   :  { %3028 = vmatpush3.bf16.msra.mxu1 %v3548_v49 }
 0x2f0   :  { %3029 = vmatprep.subr.bf16.mxu1 %v3584_v33 }
 0x2f3   :  { %3030 = vmatpush3.bf16.msra.mxu1 %v3549_v50 }
 0x2f4   :  { %3031 = vmatprep.subr.bf16.mxu1 %v3584_v33 }
 0x2f7   :  { %3032 = vmatpush3.bf16.msra.mxu1 %v3550_v51 }
 0x2f8   :  { %3037 = vmatprep.subr.bf16.mxu1 %v3584_v33 }
 0x3ad   :  { %v2993_v52 = vpop.f32.mrb[4].mxu1 }
 0x3ae   :  { %v2994_v54 = vpop.f32.mrb[5].mxu1 }
 0x3af   :  { %v2995_v55 = vadd.f32 %v2994_v54, %v2993_v52  ;;  %v2996_v56 = vpop.f32.mrb[6].mxu1 }
 0x3b0   :  { %v2997_v57 = vpop.f32.mrb[7].mxu1 }
 0x3b1   :  { %v2408_v58 = vadd.f32 %v2995_v55, %v2942_v53 }
 0x3b3   :  { %v2413_v59 = vmax.f32 %v2408_v58, 0.0 }
 0x3b5   :  { %v2414_v61 = vpack.c.bf16 %v2413_v59, %v2413_v59 }
 0x3b7   :  { %3034 = vmatmul.mubr.bf16.vlgmr.msra.gmra.mrb[8].mxu1 %v2414_v61 }
 0x3b8   :  { %3038 = vmatpush3.bf16.msra.mxu1 %v3551_v60  ;;  %3053 = vmatprep.mubr.msk.bf16.mxu1 %vm3585_vm0, %v3584_v33 }
 0x3b9   :  { %3039 = vmatprep.subr.bf16.mxu1 %v3584_v33 }
 0x3bc   :  { %3040 = vmatpush3.bf16.msra.mxu1 %v3552_v62 }
 0x3bd   :  { %3041 = vmatprep.subr.bf16.mxu1 %v3584_v33 }
 0x3c0   :  { %3042 = vmatpush3.bf16.msra.mxu1 %v3553_v63 }
 0x3c1   :  { %3043 = vmatprep.subr.bf16.mxu1 %v3584_v33 }
 0x3c4   :  { %3044 = vmatpush3.bf16.msra.mxu1 %v3554_v0 }
 0x3c5   :  { %3045 = vmatprep.subr.bf16.mxu1 %v3584_v33 }
 0x3c8   :  { %3046 = vmatpush3.bf16.msra.mxu1 %v3555_v1 }
 0x3c9   :  { %3047 = vmatprep.subr.bf16.mxu1 %v3584_v33 }
 0x3cc   :  { %3048 = vmatpush3.bf16.msra.mxu1 %v3556_v2 }
 0x3cd   :  { %3049 = vmatprep.subr.bf16.mxu1 %v3584_v33 }
 0x3d0   :  { %3050 = vmatpush3.bf16.msra.mxu1 %v3557_v3 }
 0x3d1   :  { %3051 = vmatprep.subr.bf16.mxu1 %v3584_v33 }
 0x3d4   :  { %3052 = vmatpush3.bf16.msra.mxu1 %v3558_v4 }
 0x48a   :  { %v2520_v6 = vpop.f32.mrb[8].mxu1 }
 0x48b   :  { %v2521_v7 = vadd.f32 %v2959_v5, %v2520_v6  ;;  %v3035_v8 = vpop.f32.mrb[9].mxu1 }
 0x48c   :  { %v2523_v9 = vpop.f32.mrb[10].mxu1 }
 0x48d   :  { %v2526_v10 = vmax.f32 %v2521_v7, 0.0  ;;  %v3036_v11 = vpop.f32.mrb[11].mxu1 }
 0x48f   :  { %v2527_v12 = vpack.c.bf16 %v2526_v10, %v2526_v10 }
 0x491   :  { %3054 = vmatmul.mubr.bf16.vlgmr.msra.gmra.mrb[12].mxu1 %v2527_v12 }
 0x564   :  { %v2633_v14 = vpop.f32.mrb[12].mxu1 }
 0x565   :  { %v2634_v15 = vadd.f32 %v2968_v13, %v2633_v14  ;;  %v3055_v16 = vpop.f32.mrb[13].mxu1 }
 0x566   :  { %v2636_v17 = vpop.f32.mrb[14].mxu1 }
 0x567   :  { %2639 = vst [vmem:[#allocation2] sm:$0xff] %v2634_v15  ;;  %v3056_v18 = vpop.f32.mrb[15].mxu1 }
 0x568   :  { %3570 = shalt.err (!%p3567_p4)
}
 0x569   :  { %s3571_s10 = scalar_lea.hbm %s4707_s11, 128 }
 0x56a   :  { %p3572_p5 = scmp.ne.s32.totalorder %s4707_s11, %s3571_s10  ;;  %p3575_p6 = scmp.lt.u32.totalorder %s3571_s10, %s4707_s11 }
 0x56c   :  { %p3577_p7 = pnand %p3575_p6, %p3572_p5 }
 0x56e   :  { %3580 = shalt.err (!%p3577_p7)
}
 0x56f   :  { %2649 = dma.vmem_to_hbm [thread:$0]  %s2647_s24, 128, %s4707_s11, [#allocation3]  }
 0x570   :  { %3581 = dma.done.wait [#allocation3], 128  }
 0x571   :  { %3582 = vsyncadd [#allocation3], 4294967168 }
 0x572   :  { %2653 = vsyncpa [#allocation3], 1 }

</bundles_post_ra>
